<compile_context>
chip_gen: v5e
topology: v5e:2x2
jax: 0.10.0
libtpu: 0.0.40
codegen_flags: <defaults>
</compile_context>

<pallas_src>
import math
from functools import partial

import jax
import jax.numpy as jnp
from jax.experimental import pallas as pl
from jax.experimental.pallas import tpu as pltpu

# ----------------------------- config (small) -----------------------------
EMBED_DIM = 32

IMG_SIZE = 16
PATCH = 8
V_WIDTH = 32
V_LAYERS = 2
V_HEADS = 2           # head_width = 16
MLP_RATIO = 4.0

CTX_LEN = 8
VOCAB = 64
T_WIDTH = 32
T_LAYERS = 2
T_HEADS = 2

_VMEM = pl.BlockSpec(memory_space=pltpu.MemorySpace.VMEM)

_BLOCK_PARAM_NAMES = (
    "ln1_g", "ln1_b",
    "attn_in_w", "attn_in_b",
    "attn_out_w", "attn_out_b",
    "ln2_g", "ln2_b",
    "mlp_fc_w", "mlp_fc_b",
    "mlp_proj_w", "mlp_proj_b",
)


# --------------------------- in-kernel helpers -----------------------------
def _ln(x, g, b, eps=1e-5):
    """LayerNorm over the last axis. x: (M, D) f32, g/b: (1, D)."""
    mean = jnp.mean(x, axis=-1, keepdims=True)
    var = jnp.mean(jnp.square(x - mean), axis=-1, keepdims=True)
    return (x - mean) * jax.lax.rsqrt(var + eps) * g + b


def _gelu(x):
    """Exact-erf GELU (matches torch.nn.GELU)."""
    return 0.5 * x * (1.0 + jax.lax.erf(x * (1.0 / math.sqrt(2.0))))


# ----------------------------- Pallas kernels -----------------------------
def _matmul_kernel(x_ref, w_ref, o_ref):
    o_ref[...] = jnp.dot(x_ref[...], w_ref[...],
                         preferred_element_type=jnp.float32).astype(o_ref.dtype)


def matmul_nobias(x, w):
    """x: (M, K), w: (K, N) -> (M, N). No bias materialization."""
    M, _ = x.shape
    N = w.shape[1]
    return pl.pallas_call(
        _matmul_kernel,
        out_shape=jax.ShapeDtypeStruct((M, N), x.dtype),
        in_specs=[_VMEM, _VMEM],
        out_specs=_VMEM,
    )(x, w)


def _ln_proj_kernel(x_ref, g_ref, b_ref, w_ref, o_ref):
    y = _ln(x_ref[...].astype(jnp.float32), g_ref[...], b_ref[...])
    o_ref[...] = jnp.dot(y, w_ref[...],
                         preferred_element_type=jnp.float32).astype(o_ref.dtype)


def ln_proj(x, g, b, w):
    """Fused LayerNorm + (bias-free) projection. x: (M, D), w: (D, E)."""
    M, D = x.shape
    E = w.shape[1]
    return pl.pallas_call(
        _ln_proj_kernel,
        out_shape=jax.ShapeDtypeStruct((M, E), x.dtype),
        in_specs=[_VMEM, _VMEM, _VMEM, _VMEM],
        out_specs=_VMEM,
    )(x, g.reshape(1, D), b.reshape(1, D), w)


def _tower_kernel(*refs, heads, causal, pre_ln):
    """Whole transformer tower for one batch element, one layer per grid step.

    Grid = (batch, layers).  The residual stream is carried in a VMEM scratch
    across the layer axis; per-layer weights arrive via the layer grid axis.
    """
    it = iter(refs)
    x_ref = next(it)           # (1, L, D)  input embeddings (no pos yet)
    pos_ref = next(it)         # (L, D)     positional embedding
    if pre_ln:
        lnpre_g_ref = next(it)   # (1, D)
        lnpre_b_ref = next(it)   # (1, D)
    (ln1_g_ref, ln1_b_ref,
     wqkv_ref, bqkv_ref,
     wo_ref, bo_ref,
     ln2_g_ref, ln2_b_ref,
     wfc_ref, bfc_ref,
     wproj_ref, bproj_ref,
     o_ref, x_sc) = [next(it) for _ in range(14)]

    layer = pl.program_id(1)
    n_layers = pl.num_programs(1)

    # ---- layer-0 prologue: pos add (+ optional pre-LN) into VMEM residual --
    @pl.when(layer == 0)
    def _():
        x0 = x_ref[0].astype(jnp.float32) + pos_ref[...]
        if pre_ln:
            x0 = _ln(x0, lnpre_g_ref[...], lnpre_b_ref[...])
        x_sc[...] = x0

    x = x_sc[...]                                          # (L, D) f32
    L, D = x.shape
    Dh = D // heads
    scale = 1.0 / math.sqrt(Dh)

    # ---- attention sub-block ----------------------------------------------
    y = _ln(x, ln1_g_ref[0], ln1_b_ref[0])
    qkv = jnp.dot(y, wqkv_ref[0],
                  preferred_element_type=jnp.float32) + bqkv_ref[0]   # (L, 3D)

    if causal:
        row = jax.lax.broadcasted_iota(jnp.int32, (L, L), 0)
        col = jax.lax.broadcasted_iota(jnp.int32, (L, L), 1)
        keep = col <= row                                  # lower-triangular keep

    wo = wo_ref[0]                                         # (D, D)
    attn_out = bo_ref[0].astype(jnp.float32)               # (1, D) -> broadcasts

    # Static (unrolled) head loop: slice the VMEM-resident QKV buffer at
    # fixed lane offsets; fold each head directly into the output projection.
    for h in range(heads):
        q = qkv[:, h * Dh:(h + 1) * Dh] * scale            # (L, Dh)
        k = qkv[:, D + h * Dh:D + (h + 1) * Dh]            # (L, Dh)
        v = qkv[:, 2 * D + h * Dh:2 * D + (h + 1) * Dh]    # (L, Dh)

        s = jnp.dot(q, k.T, preferred_element_type=jnp.float32)   # (L, L)
        if causal:
            s = jnp.where(keep, s, -jnp.inf)
        s = s - jnp.max(s, axis=-1, keepdims=True)
        p = jnp.exp(s)
        p = p * pl.reciprocal(jnp.sum(p, axis=-1, keepdims=True), approx=True)

        o_h = jnp.dot(p, v, preferred_element_type=jnp.float32)   # (L, Dh)
        attn_out = attn_out + jnp.dot(o_h, wo[h * Dh:(h + 1) * Dh, :],
                                      preferred_element_type=jnp.float32)

    x = x + attn_out                                       # residual

    # ---- MLP sub-block ------------------------------------------------------
    y2 = _ln(x, ln2_g_ref[0], ln2_b_ref[0])
    hdn = jnp.dot(y2, wfc_ref[0],
                  preferred_element_type=jnp.float32) + bfc_ref[0]    # (L, 4D)
    hdn = _gelu(hdn)
    x = x + jnp.dot(hdn, wproj_ref[0],
                    preferred_element_type=jnp.float32) + bproj_ref[0]

    x_sc[...] = x                                          # carry to next layer

    # ---- final-layer epilogue: flush residual stream to the output block ----
    @pl.when(layer == n_layers - 1)
    def _():
        o_ref[0] = x.astype(o_ref.dtype)


def transformer_tower(x, pos, blocks, *, heads, causal,
                      pre_ln_g=None, pre_ln_b=None):
    """x: (B, L, D). Whole tower (all layers) in one pallas_call."""
    B, L, D = x.shape
    n_layers = blocks["attn_in_w"].shape[0]
    pre_ln = pre_ln_g is not None

    args = [x, pos]
    in_specs = [
        # Activation block index is constant across the layer axis, so the
        # DMA happens once per batch element.
        pl.BlockSpec((1, L, D), lambda b, l: (b, 0, 0)),
        pl.BlockSpec((L, D), lambda b, l: (0, 0)),
    ]
    if pre_ln:
        args += [pre_ln_g.reshape(1, D), pre_ln_b.reshape(1, D)]
        in_specs += [pl.BlockSpec((1, D), lambda b, l: (0, 0))] * 2
    for name in _BLOCK_PARAM_NAMES:
        w = blocks[name]                                   # (n_layers, ...)
        args.append(w)
        in_specs.append(pl.BlockSpec((1,) + w.shape[1:], lambda b, l: (l, 0, 0)))

    return pl.pallas_call(
        partial(_tower_kernel, heads=heads, causal=causal, pre_ln=pre_ln),
        grid=(B, n_layers),
        out_shape=jax.ShapeDtypeStruct((B, L, D), x.dtype),
        in_specs=in_specs,
        out_specs=pl.BlockSpec((1, L, D), lambda b, l: (b, 0, 0)),
        scratch_shapes=[pltpu.VMEM((L, D), jnp.float32)],
        compiler_params=pltpu.CompilerParams(
            dimension_semantics=("parallel", "arbitrary")),
    )(*args)


# ------------------------------- CLIP model -------------------------------
def l2_normalize(x, eps=1e-12):
    n = jnp.sqrt(jnp.sum(x * x, axis=-1, keepdims=True))
    return x / jnp.maximum(n, eps)


def encode_image(vp, image):
    """image: (B, 3, H, W) NCHW."""
    B = image.shape[0]
    g = IMG_SIZE // PATCH
    # non-overlapping conv (stride == kernel) == patchify + matmul (bias-free)
    patches = image.reshape(B, 3, g, PATCH, g, PATCH)
    patches = patches.transpose(0, 2, 4, 1, 3, 5).reshape(B * g * g, 3 * PATCH * PATCH)
    x = matmul_nobias(patches, vp["conv_w"]).reshape(B, g * g, V_WIDTH)
    cls = jnp.broadcast_to(vp["class_emb"].reshape(1, 1, V_WIDTH), (B, 1, V_WIDTH))
    x = jnp.concatenate([cls, x], axis=1)                  # (B, N+1, W)
    # pos add + ln_pre + all residual blocks in one fused tower kernel
    x = transformer_tower(x, vp["pos_emb"], vp["blocks"],
                          heads=V_HEADS, causal=False,
                          pre_ln_g=vp["ln_pre_g"], pre_ln_b=vp["ln_pre_b"])
    pooled = x[:, 0, :]                                    # CLS token
    return ln_proj(pooled, vp["ln_post_g"], vp["ln_post_b"], vp["proj"])


def encode_text(tp, text):
    """text: (B, CTX) int32 token ids."""
    B, _ = text.shape
    x = jnp.take(tp["token_emb"], text, axis=0)            # gather: JAX glue
    # pos add + all residual blocks (causal) in one fused tower kernel
    x = transformer_tower(x, tp["pos_emb"], tp["blocks"],
                          heads=T_HEADS, causal=True)
    eot = jnp.argmax(text, axis=-1)                        # highest token id = EOT
    pooled = x[jnp.arange(B), eot]                         # (B, D)
    # ln_final is per-token, so it commutes with the EOT gather.
    return ln_proj(pooled, tp["ln_final_g"], tp["ln_final_b"], tp["text_projection"])


@jax.jit
def clip_forward(params, image, text):
    image_features = l2_normalize(encode_image(params["visual"], image))
    text_features = l2_normalize(encode_text(params["text"], text))
    return image_features, text_features, jnp.exp(params["logit_scale"])


# ------------------------------ param init --------------------------------
def _init_blocks(key, width, mlp_ratio, n_layers):
    """Per-layer block params stacked along a leading layer axis."""
    hidden = int(width * mlp_ratio)
    s = 0.02
    D = width
    ks = jax.random.split(key, 4)
    return {
        "ln1_g": jnp.ones((n_layers, 1, D), jnp.float32),
        "ln1_b": jnp.zeros((n_layers, 1, D), jnp.float32),
        "attn_in_w": s * jax.random.normal(ks[0], (n_layers, D, 3 * D), jnp.float32),
        "attn_in_b": jnp.zeros((n_layers, 1, 3 * D), jnp.float32),
        "attn_out_w": s * jax.random.normal(ks[1], (n_layers, D, D), jnp.float32),
        "attn_out_b": jnp.zeros((n_layers, 1, D), jnp.float32),
        "ln2_g": jnp.ones((n_layers, 1, D), jnp.float32),
        "ln2_b": jnp.zeros((n_layers, 1, D), jnp.float32),
        "mlp_fc_w": s * jax.random.normal(ks[2], (n_layers, D, hidden), jnp.float32),
        "mlp_fc_b": jnp.zeros((n_layers, 1, hidden), jnp.float32),
        "mlp_proj_w": s * jax.random.normal(ks[3], (n_layers, hidden, D), jnp.float32),
        "mlp_proj_b": jnp.zeros((n_layers, 1, D), jnp.float32),
    }


def init_clip_params(key):
    kv, kt = jax.random.split(key)
    g = IMG_SIZE // PATCH
    n_tok = g * g + 1
    kvs = jax.random.split(kv, 5)
    visual = {
        # conv1.weight (W, 3, P, P) stored pre-reshaped as (3*P*P, W) for matmul
        "conv_w": 0.02 * jax.random.normal(kvs[0], (3 * PATCH * PATCH, V_WIDTH), jnp.float32),
        "class_emb": 0.02 * jax.random.normal(kvs[1], (V_WIDTH,), jnp.float32),
        "pos_emb": 0.02 * jax.random.normal(kvs[2], (n_tok, V_WIDTH), jnp.float32),
        "ln_pre_g": jnp.ones((V_WIDTH,), jnp.float32),
        "ln_pre_b": jnp.zeros((V_WIDTH,), jnp.float32),
        "ln_post_g": jnp.ones((V_WIDTH,), jnp.float32),
        "ln_post_b": jnp.zeros((V_WIDTH,), jnp.float32),
        "proj": 0.02 * jax.random.normal(kvs[3], (V_WIDTH, EMBED_DIM), jnp.float32),
        "blocks": _init_blocks(kvs[4], V_WIDTH, MLP_RATIO, V_LAYERS),
    }
    kts = jax.random.split(kt, 4)
    # causal attn_mask (build_attention_mask) is generated in-kernel via iota.
    text = {
        "token_emb": 0.02 * jax.random.normal(kts[0], (VOCAB, T_WIDTH), jnp.float32),
        "pos_emb": 0.01 * jax.random.normal(kts[1], (CTX_LEN, T_WIDTH), jnp.float32),
        "ln_final_g": jnp.ones((T_WIDTH,), jnp.float32),
        "ln_final_b": jnp.zeros((T_WIDTH,), jnp.float32),
        "text_projection": 0.02 * jax.random.normal(kts[2], (T_WIDTH, EMBED_DIM), jnp.float32),
        "blocks": _init_blocks(kts[3], T_WIDTH, MLP_RATIO, T_LAYERS),
    }
    return {
        "visual": visual,
        "text": text,
        "logit_scale": jnp.asarray(math.log(1.0 / 0.07), jnp.float32),
    }


# --------------------------------- main ------------------------------------
if __name__ == "__main__":
    key = jax.random.PRNGKey(0)
    k_img, k_txt, k_par = jax.random.split(key, 3)

    image = jax.random.normal(k_img, (2, 3, IMG_SIZE, IMG_SIZE), jnp.float32)  # NCHW
    text = jax.random.randint(k_txt, (2, CTX_LEN), 1, VOCAB - 1, dtype=jnp.int32)
    text = text.at[:, -1].set(VOCAB - 1)   # EOT token (highest id) at last position

    params = init_clip_params(k_par)
    img_f, txt_f, scale = clip_forward(params, image, text)
    jax.block_until_ready((img_f, txt_f, scale))

    assert img_f.shape == (2, EMBED_DIM) and txt_f.shape == (2, EMBED_DIM)
    assert jnp.allclose(jnp.linalg.norm(img_f, axis=-1), 1.0, atol=1e-4)
    assert jnp.allclose(jnp.linalg.norm(txt_f, axis=-1), 1.0, atol=1e-4)
    assert jnp.isfinite(scale)
    assert bool(jnp.all(jnp.isfinite(img_f))) and bool(jnp.all(jnp.isfinite(txt_f)))
    print("KERNEL_OK")
</pallas_src>

<mosaic_0001>
module attributes {stable_mosaic.version = 11 : i64} {
  func.func @_ln_proj_kernel(%arg0: memref<2x32xf32, #tpu.memory_space<vmem>>, %arg1: memref<1x32xf32, #tpu.memory_space<vmem>>, %arg2: memref<1x32xf32, #tpu.memory_space<vmem>>, %arg3: memref<32x32xf32, #tpu.memory_space<vmem>>, %arg4: memref<2x32xf32, #tpu.memory_space<vmem>>) attributes {dimension_semantics = [], scalar_prefetch = 0 : i64, scratch_operands = 0 : i64, tpu.core_type = #tpu.core_type<tc>} {
    %c0 = arith.constant 0 : index
    %c0_0 = arith.constant 0 : index
    %0 = vector.load %arg0[%c0, %c0_0] : memref<2x32xf32, #tpu.memory_space<vmem>>, vector<2x32xf32>
    %c0_1 = arith.constant 0 : index
    %c0_2 = arith.constant 0 : index
    %1 = vector.load %arg1[%c0_1, %c0_2] : memref<1x32xf32, #tpu.memory_space<vmem>>, vector<1x32xf32>
    %c0_3 = arith.constant 0 : index
    %c0_4 = arith.constant 0 : index
    %2 = vector.load %arg2[%c0_3, %c0_4] : memref<1x32xf32, #tpu.memory_space<vmem>>, vector<1x32xf32>
    %cst = arith.constant dense<0.000000e+00> : vector<2xf32>
    %3 = vector.multi_reduction <add>, %0, %cst [1] : vector<2x32xf32> to vector<2xf32>
    %4 = vector.shape_cast %3 : vector<2xf32> to vector<2x1xf32>
    %cst_5 = arith.constant 3.200000e+01 : f32
    %5 = vector.broadcast %cst_5 : f32 to vector<2x1xf32>
    %6 = arith.divf %4, %5 : vector<2x1xf32>
    %7 = vector.broadcast %6 : vector<2x1xf32> to vector<2x32xf32>
    %8 = arith.subf %0, %7 : vector<2x32xf32>
    %9 = arith.mulf %8, %8 : vector<2x32xf32>
    %cst_6 = arith.constant dense<0.000000e+00> : vector<2xf32>
    %10 = vector.multi_reduction <add>, %9, %cst_6 [1] : vector<2x32xf32> to vector<2xf32>
    %11 = vector.shape_cast %10 : vector<2xf32> to vector<2x1xf32>
    %cst_7 = arith.constant 3.200000e+01 : f32
    %12 = vector.broadcast %cst_7 : f32 to vector<2x1xf32>
    %13 = arith.divf %11, %12 : vector<2x1xf32>
    %14 = vector.broadcast %6 : vector<2x1xf32> to vector<2x32xf32>
    %15 = arith.subf %0, %14 : vector<2x32xf32>
    %cst_8 = arith.constant 9.99999974E-6 : f32
    %16 = vector.broadcast %cst_8 : f32 to vector<2x1xf32>
    %17 = arith.addf %13, %16 : vector<2x1xf32>
    %18 = math.rsqrt %17 : vector<2x1xf32>
    %19 = vector.broadcast %18 : vector<2x1xf32> to vector<2x32xf32>
    %20 = arith.mulf %15, %19 : vector<2x32xf32>
    %21 = vector.broadcast %1 : vector<1x32xf32> to vector<2x32xf32>
    %22 = arith.mulf %20, %21 : vector<2x32xf32>
    %23 = vector.broadcast %2 : vector<1x32xf32> to vector<2x32xf32>
    %24 = arith.addf %22, %23 : vector<2x32xf32>
    %c0_9 = arith.constant 0 : index
    %c0_10 = arith.constant 0 : index
    %25 = vector.load %arg3[%c0_9, %c0_10] : memref<32x32xf32, #tpu.memory_space<vmem>>, vector<32x32xf32>
    %cst_11 = arith.constant dense<0.000000e+00> : vector<2x32xf32>
    %26 = tpu.matmul %24, %25, %cst_11 {dimension_numbers = #tpu.dot_dimension_numbers<[1], [0], [0], [1], [0, 0, 1, 1], [], []>} : vector<2x32xf32>, vector<32x32xf32>, vector<2x32xf32> -> vector<2x32xf32>
    %c0_12 = arith.constant 0 : index
    %c0_13 = arith.constant 0 : index
    %27 = vector.load %arg4[%c0_12, %c0_13] : memref<2x32xf32, #tpu.memory_space<vmem>>, vector<2x32xf32>
    tpu.vector_store %arg4[%c0_12, %c0_13], %26 {strides = array<i32>} : memref<2x32xf32, #tpu.memory_space<vmem>>, vector<2x32xf32>,
    return
  }
}

module attributes {stable_mosaic.version = 11 : i64} {
  func.func @_tower_kernel(%arg0: i32, %arg1: i32, %arg2: memref<1x5x32xf32, #tpu.memory_space<vmem>>, %arg3: memref<5x32xf32, #tpu.memory_space<vmem>>, %arg4: memref<1x32xf32, #tpu.memory_space<vmem>>, %arg5: memref<1x32xf32, #tpu.memory_space<vmem>>, %arg6: memref<1x1x32xf32, #tpu.memory_space<vmem>>, %arg7: memref<1x1x32xf32, #tpu.memory_space<vmem>>, %arg8: memref<1x32x96xf32, #tpu.memory_space<vmem>>, %arg9: memref<1x1x96xf32, #tpu.memory_space<vmem>>, %arg10: memref<1x32x32xf32, #tpu.memory_space<vmem>>, %arg11: memref<1x1x32xf32, #tpu.memory_space<vmem>>, %arg12: memref<1x1x32xf32, #tpu.memory_space<vmem>>, %arg13: memref<1x1x32xf32, #tpu.memory_space<vmem>>, %arg14: memref<1x32x128xf32, #tpu.memory_space<vmem>>, %arg15: memref<1x1x128xf32, #tpu.memory_space<vmem>>, %arg16: memref<1x128x32xf32, #tpu.memory_space<vmem>>, %arg17: memref<1x1x32xf32, #tpu.memory_space<vmem>>, %arg18: memref<1x5x32xf32, #tpu.memory_space<vmem>>, %arg19: memref<5x32xf32, #tpu.memory_space<vmem>>) attributes {dimension_semantics = [#tpu.dimension_semantics<parallel>, #tpu.dimension_semantics<arbitrary>], iteration_bounds = array<i64: 2, 2>, scalar_prefetch = 0 : i64, scratch_operands = 1 : i64, tpu.core_type = #tpu.core_type<tc>, window_params = [{transform_indices = @transform_0, window_bounds = array<i64: 1, 5, 32>}, {pipeline_mode = #tpu.pipeline_mode<synchronous>, transform_indices = @transform_1, window_bounds = array<i64: 5, 32>}, {pipeline_mode = #tpu.pipeline_mode<synchronous>, transform_indices = @transform_2, window_bounds = array<i64: 1, 32>}, {pipeline_mode = #tpu.pipeline_mode<synchronous>, transform_indices = @transform_3, window_bounds = array<i64: 1, 32>}, {transform_indices = @transform_4, window_bounds = array<i64: 1, 1, 32>}, {transform_indices = @transform_5, window_bounds = array<i64: 1, 1, 32>}, {transform_indices = @transform_6, window_bounds = array<i64: 1, 32, 96>}, {transform_indices = @transform_7, window_bounds = array<i64: 1, 1, 96>}, {transform_indices = @transform_8, window_bounds = array<i64: 1, 32, 32>}, {transform_indices = @transform_9, window_bounds = array<i64: 1, 1, 32>}, {transform_indices = @transform_10, window_bounds = array<i64: 1, 1, 32>}, {transform_indices = @transform_11, window_bounds = array<i64: 1, 1, 32>}, {transform_indices = @transform_12, window_bounds = array<i64: 1, 32, 128>}, {transform_indices = @transform_13, window_bounds = array<i64: 1, 1, 128>}, {transform_indices = @transform_14, window_bounds = array<i64: 1, 128, 32>}, {transform_indices = @transform_15, window_bounds = array<i64: 1, 1, 32>}, {transform_indices = @transform_16, window_bounds = array<i64: 1, 5, 32>}]} {
    %c0_i32 = arith.constant 0 : i32
    %0 = arith.cmpi eq, %arg1, %c0_i32 : i32
    %1 = arith.extui %0 : i1 to i32
    %c0_i32_0 = arith.constant 0 : i32
    %2 = arith.cmpi ne, %1, %c0_i32_0 : i32
    scf.if %2 {
      %c0_68 = arith.constant 0 : index
      %c0_69 = arith.constant 0 : index
      %c0_70 = arith.constant 0 : index
      %138 = vector.load %arg2[%c0_68, %c0_69, %c0_70] : memref<1x5x32xf32, #tpu.memory_space<vmem>>, vector<1x5x32xf32>
      %139 = vector.shape_cast %138 : vector<1x5x32xf32> to vector<5x32xf32>
      %c0_71 = arith.constant 0 : index
      %c0_72 = arith.constant 0 : index
      %140 = vector.load %arg3[%c0_71, %c0_72] : memref<5x32xf32, #tpu.memory_space<vmem>>, vector<5x32xf32>
      %141 = arith.addf %139, %140 : vector<5x32xf32>
      %c0_73 = arith.constant 0 : index
      %c0_74 = arith.constant 0 : index
      %142 = vector.load %arg4[%c0_73, %c0_74] : memref<1x32xf32, #tpu.memory_space<vmem>>, vector<1x32xf32>
      %c0_75 = arith.constant 0 : index
      %c0_76 = arith.constant 0 : index
      %143 = vector.load %arg5[%c0_75, %c0_76] : memref<1x32xf32, #tpu.memory_space<vmem>>, vector<1x32xf32>
      %cst_77 = arith.constant dense<0.000000e+00> : vector<5xf32>
      %144 = vector.multi_reduction <add>, %141, %cst_77 [1] : vector<5x32xf32> to vector<5xf32>
      %145 = vector.shape_cast %144 : vector<5xf32> to vector<5x1xf32>
      %cst_78 = arith.constant 3.200000e+01 : f32
      %146 = vector.broadcast %cst_78 : f32 to vector<5x1xf32>
      %147 = arith.divf %145, %146 : vector<5x1xf32>
      %148 = vector.broadcast %147 : vector<5x1xf32> to vector<5x32xf32>
      %149 = arith.subf %141, %148 : vector<5x32xf32>
      %150 = arith.mulf %149, %149 : vector<5x32xf32>
      %cst_79 = arith.constant dense<0.000000e+00> : vector<5xf32>
      %151 = vector.multi_reduction <add>, %150, %cst_79 [1] : vector<5x32xf32> to vector<5xf32>
      %152 = vector.shape_cast %151 : vector<5xf32> to vector<5x1xf32>
      %cst_80 = arith.constant 3.200000e+01 : f32
      %153 = vector.broadcast %cst_80 : f32 to vector<5x1xf32>
      %154 = arith.divf %152, %153 : vector<5x1xf32>
      %155 = vector.broadcast %147 : vector<5x1xf32> to vector<5x32xf32>
      %156 = arith.subf %141, %155 : vector<5x32xf32>
      %cst_81 = arith.constant 9.99999974E-6 : f32
      %157 = vector.broadcast %cst_81 : f32 to vector<5x1xf32>
      %158 = arith.addf %154, %157 : vector<5x1xf32>
      %159 = math.rsqrt %158 : vector<5x1xf32>
      %160 = vector.broadcast %159 : vector<5x1xf32> to vector<5x32xf32>
      %161 = arith.mulf %156, %160 : vector<5x32xf32>
      %162 = vector.broadcast %142 : vector<1x32xf32> to vector<5x32xf32>
      %163 = arith.mulf %161, %162 : vector<5x32xf32>
      %164 = vector.broadcast %143 : vector<1x32xf32> to vector<5x32xf32>
      %165 = arith.addf %163, %164 : vector<5x32xf32>
      %c0_82 = arith.constant 0 : index
      %c0_83 = arith.constant 0 : index
      %166 = vector.load %arg19[%c0_82, %c0_83] : memref<5x32xf32, #tpu.memory_space<vmem>>, vector<5x32xf32>
      tpu.vector_store %arg19[%c0_82, %c0_83], %165 {strides = array<i32>} : memref<5x32xf32, #tpu.memory_space<vmem>>, vector<5x32xf32>,
    } else {
    }
    %c0 = arith.constant 0 : index
    %c0_1 = arith.constant 0 : index
    %3 = vector.load %arg19[%c0, %c0_1] : memref<5x32xf32, #tpu.memory_space<vmem>>, vector<5x32xf32>
    %c0_2 = arith.constant 0 : index
    %c0_3 = arith.constant 0 : index
    %c0_4 = arith.constant 0 : index
    %4 = vector.load %arg6[%c0_2, %c0_3, %c0_4] : memref<1x1x32xf32, #tpu.memory_space<vmem>>, vector<1x1x32xf32>
    %5 = vector.shape_cast %4 : vector<1x1x32xf32> to vector<1x32xf32>
    %c0_5 = arith.constant 0 : index
    %c0_6 = arith.constant 0 : index
    %c0_7 = arith.constant 0 : index
    %6 = vector.load %arg7[%c0_5, %c0_6, %c0_7] : memref<1x1x32xf32, #tpu.memory_space<vmem>>, vector<1x1x32xf32>
    %7 = vector.shape_cast %6 : vector<1x1x32xf32> to vector<1x32xf32>
    %cst = arith.constant dense<0.000000e+00> : vector<5xf32>
    %8 = vector.multi_reduction <add>, %3, %cst [1] : vector<5x32xf32> to vector<5xf32>
    %9 = vector.shape_cast %8 : vector<5xf32> to vector<5x1xf32>
    %cst_8 = arith.constant 3.200000e+01 : f32
    %10 = vector.broadcast %cst_8 : f32 to vector<5x1xf32>
    %11 = arith.divf %9, %10 : vector<5x1xf32>
    %12 = vector.broadcast %11 : vector<5x1xf32> to vector<5x32xf32>
    %13 = arith.subf %3, %12 : vector<5x32xf32>
    %14 = arith.mulf %13, %13 : vector<5x32xf32>
    %cst_9 = arith.constant dense<0.000000e+00> : vector<5xf32>
    %15 = vector.multi_reduction <add>, %14, %cst_9 [1] : vector<5x32xf32> to vector<5xf32>
    %16 = vector.shape_cast %15 : vector<5xf32> to vector<5x1xf32>
    %cst_10 = arith.constant 3.200000e+01 : f32
    %17 = vector.broadcast %cst_10 : f32 to vector<5x1xf32>
    %18 = arith.divf %16, %17 : vector<5x1xf32>
    %19 = vector.broadcast %11 : vector<5x1xf32> to vector<5x32xf32>
    %20 = arith.subf %3, %19 : vector<5x32xf32>
    %cst_11 = arith.constant 9.99999974E-6 : f32
    %21 = vector.broadcast %cst_11 : f32 to vector<5x1xf32>
    %22 = arith.addf %18, %21 : vector<5x1xf32>
    %23 = math.rsqrt %22 : vector<5x1xf32>
    %24 = vector.broadcast %23 : vector<5x1xf32> to vector<5x32xf32>
    %25 = arith.mulf %20, %24 : vector<5x32xf32>
    %26 = vector.broadcast %5 : vector<1x32xf32> to vector<5x32xf32>
    %27 = arith.mulf %25, %26 : vector<5x32xf32>
    %28 = vector.broadcast %7 : vector<1x32xf32> to vector<5x32xf32>
    %29 = arith.addf %27, %28 : vector<5x32xf32>
    %c0_12 = arith.constant 0 : index
    %c0_13 = arith.constant 0 : index
    %c0_14 = arith.constant 0 : index
    %30 = vector.load %arg8[%c0_12, %c0_13, %c0_14] : memref<1x32x96xf32, #tpu.memory_space<vmem>>, vector<1x32x96xf32>
    %31 = vector.shape_cast %30 : vector<1x32x96xf32> to vector<32x96xf32>
    %cst_15 = arith.constant dense<0.000000e+00> : vector<5x96xf32>
    %32 = tpu.matmul %29, %31, %cst_15 {dimension_numbers = #tpu.dot_dimension_numbers<[1], [0], [0], [1], [0, 0, 1, 1], [], []>} : vector<5x32xf32>, vector<32x96xf32>, vector<5x96xf32> -> vector<5x96xf32>
    %c0_16 = arith.constant 0 : index
    %c0_17 = arith.constant 0 : index
    %c0_18 = arith.constant 0 : index
    %33 = vector.load %arg9[%c0_16, %c0_17, %c0_18] : memref<1x1x96xf32, #tpu.memory_space<vmem>>, vector<1x1x96xf32>
    %34 = vector.shape_cast %33 : vector<1x1x96xf32> to vector<1x96xf32>
    %35 = vector.broadcast %34 : vector<1x96xf32> to vector<5x96xf32>
    %36 = arith.addf %32, %35 : vector<5x96xf32>
    %c0_19 = arith.constant 0 : index
    %c0_20 = arith.constant 0 : index
    %c0_21 = arith.constant 0 : index
    %37 = vector.load %arg10[%c0_19, %c0_20, %c0_21] : memref<1x32x32xf32, #tpu.memory_space<vmem>>, vector<1x32x32xf32>
    %38 = vector.shape_cast %37 : vector<1x32x32xf32> to vector<32x32xf32>
    %c0_22 = arith.constant 0 : index
    %c0_23 = arith.constant 0 : index
    %c0_24 = arith.constant 0 : index
    %39 = vector.load %arg11[%c0_22, %c0_23, %c0_24] : memref<1x1x32xf32, #tpu.memory_space<vmem>>, vector<1x1x32xf32>
    %40 = vector.shape_cast %39 : vector<1x1x32xf32> to vector<1x32xf32>
    %41 = vector.extract_strided_slice %36 {offsets = [0, 0], sizes = [5, 16], strides = [1, 1]} : vector<5x96xf32> to vector<5x16xf32>
    %cst_25 = arith.constant 2.500000e-01 : f32
    %42 = vector.broadcast %cst_25 : f32 to vector<5x16xf32>
    %43 = arith.mulf %41, %42 : vector<5x16xf32>
    %44 = vector.extract_strided_slice %36 {offsets = [0, 32], sizes = [5, 16], strides = [1, 1]} : vector<5x96xf32> to vector<5x16xf32>
    %45 = vector.extract_strided_slice %36 {offsets = [0, 64], sizes = [5, 16], strides = [1, 1]} : vector<5x96xf32> to vector<5x16xf32>
    %46 = tpu.transpose %44, [1, 0] : vector<5x16xf32> -> vector<16x5xf32>
    %cst_26 = arith.constant dense<0.000000e+00> : vector<5x5xf32>
    %47 = tpu.matmul %43, %46, %cst_26 {dimension_numbers = #tpu.dot_dimension_numbers<[1], [0], [0], [1], [0, 0, 1, 1], [], []>} : vector<5x16xf32>, vector<16x5xf32>, vector<5x5xf32> -> vector<5x5xf32>
    %cst_27 = arith.constant dense<0xFF800000> : vector<5xf32>
    %48 = vector.multi_reduction <maximumf>, %47, %cst_27 [1] : vector<5x5xf32> to vector<5xf32>
    %49 = vector.shape_cast %48 : vector<5xf32> to vector<5x1xf32>
    %50 = vector.broadcast %49 : vector<5x1xf32> to vector<5x5xf32>
    %51 = arith.subf %47, %50 : vector<5x5xf32>
    %52 = math.exp %51 : vector<5x5xf32>
    %cst_28 = arith.constant dense<0.000000e+00> : vector<5xf32>
    %53 = vector.multi_reduction <add>, %52, %cst_28 [1] : vector<5x5xf32> to vector<5xf32>
    %54 = vector.shape_cast %53 : vector<5xf32> to vector<5x1xf32>
    %55 = tpu.reciprocal %54 {approx = true} : vector<5x1xf32> -> vector<5x1xf32>
    %56 = vector.broadcast %55 : vector<5x1xf32> to vector<5x5xf32>
    %57 = arith.mulf %52, %56 : vector<5x5xf32>
    %cst_29 = arith.constant dense<0.000000e+00> : vector<5x16xf32>
    %58 = tpu.matmul %57, %45, %cst_29 {dimension_numbers = #tpu.dot_dimension_numbers<[1], [0], [0], [1], [0, 0, 1, 1], [], []>} : vector<5x5xf32>, vector<5x16xf32>, vector<5x16xf32> -> vector<5x16xf32>
    %59 = vector.extract_strided_slice %38 {offsets = [0, 0], sizes = [16, 32], strides = [1, 1]} : vector<32x32xf32> to vector<16x32xf32>
    %cst_30 = arith.constant dense<0.000000e+00> : vector<5x32xf32>
    %60 = tpu.matmul %58, %59, %cst_30 {dimension_numbers = #tpu.dot_dimension_numbers<[1], [0], [0], [1], [0, 0, 1, 1], [], []>} : vector<5x16xf32>, vector<16x32xf32>, vector<5x32xf32> -> vector<5x32xf32>
    %61 = vector.broadcast %40 : vector<1x32xf32> to vector<5x32xf32>
    %62 = arith.addf %61, %60 : vector<5x32xf32>
    %63 = vector.extract_strided_slice %36 {offsets = [0, 16], sizes = [5, 16], strides = [1, 1]} : vector<5x96xf32> to vector<5x16xf32>
    %cst_31 = arith.constant 2.500000e-01 : f32
    %64 = vector.broadcast %cst_31 : f32 to vector<5x16xf32>
    %65 = arith.mulf %63, %64 : vector<5x16xf32>
    %66 = vector.extract_strided_slice %36 {offsets = [0, 48], sizes = [5, 16], strides = [1, 1]} : vector<5x96xf32> to vector<5x16xf32>
    %67 = vector.extract_strided_slice %36 {offsets = [0, 80], sizes = [5, 16], strides = [1, 1]} : vector<5x96xf32> to vector<5x16xf32>
    %68 = tpu.transpose %66, [1, 0] : vector<5x16xf32> -> vector<16x5xf32>
    %cst_32 = arith.constant dense<0.000000e+00> : vector<5x5xf32>
    %69 = tpu.matmul %65, %68, %cst_32 {dimension_numbers = #tpu.dot_dimension_numbers<[1], [0], [0], [1], [0, 0, 1, 1], [], []>} : vector<5x16xf32>, vector<16x5xf32>, vector<5x5xf32> -> vector<5x5xf32>
    %cst_33 = arith.constant dense<0xFF800000> : vector<5xf32>
    %70 = vector.multi_reduction <maximumf>, %69, %cst_33 [1] : vector<5x5xf32> to vector<5xf32>
    %71 = vector.shape_cast %70 : vector<5xf32> to vector<5x1xf32>
    %72 = vector.broadcast %71 : vector<5x1xf32> to vector<5x5xf32>
    %73 = arith.subf %69, %72 : vector<5x5xf32>
    %74 = math.exp %73 : vector<5x5xf32>
    %cst_34 = arith.constant dense<0.000000e+00> : vector<5xf32>
    %75 = vector.multi_reduction <add>, %74, %cst_34 [1] : vector<5x5xf32> to vector<5xf32>
    %76 = vector.shape_cast %75 : vector<5xf32> to vector<5x1xf32>
    %77 = tpu.reciprocal %76 {approx = true} : vector<5x1xf32> -> vector<5x1xf32>
    %78 = vector.broadcast %77 : vector<5x1xf32> to vector<5x5xf32>
    %79 = arith.mulf %74, %78 : vector<5x5xf32>
    %cst_35 = arith.constant dense<0.000000e+00> : vector<5x16xf32>
    %80 = tpu.matmul %79, %67, %cst_35 {dimension_numbers = #tpu.dot_dimension_numbers<[1], [0], [0], [1], [0, 0, 1, 1], [], []>} : vector<5x5xf32>, vector<5x16xf32>, vector<5x16xf32> -> vector<5x16xf32>
    %81 = vector.extract_strided_slice %38 {offsets = [16, 0], sizes = [16, 32], strides = [1, 1]} : vector<32x32xf32> to vector<16x32xf32>
    %cst_36 = arith.constant dense<0.000000e+00> : vector<5x32xf32>
    %82 = tpu.matmul %80, %81, %cst_36 {dimension_numbers = #tpu.dot_dimension_numbers<[1], [0], [0], [1], [0, 0, 1, 1], [], []>} : vector<5x16xf32>, vector<16x32xf32>, vector<5x32xf32> -> vector<5x32xf32>
    %83 = arith.addf %62, %82 : vector<5x32xf32>
    %84 = arith.addf %3, %83 : vector<5x32xf32>
    %c0_37 = arith.constant 0 : index
    %c0_38 = arith.constant 0 : index
    %c0_39 = arith.constant 0 : index
    %85 = vector.load %arg12[%c0_37, %c0_38, %c0_39] : memref<1x1x32xf32, #tpu.memory_space<vmem>>, vector<1x1x32xf32>
    %86 = vector.shape_cast %85 : vector<1x1x32xf32> to vector<1x32xf32>
    %c0_40 = arith.constant 0 : index
    %c0_41 = arith.constant 0 : index
    %c0_42 = arith.constant 0 : index
    %87 = vector.load %arg13[%c0_40, %c0_41, %c0_42] : memref<1x1x32xf32, #tpu.memory_space<vmem>>, vector<1x1x32xf32>
    %88 = vector.shape_cast %87 : vector<1x1x32xf32> to vector<1x32xf32>
    %cst_43 = arith.constant dense<0.000000e+00> : vector<5xf32>
    %89 = vector.multi_reduction <add>, %84, %cst_43 [1] : vector<5x32xf32> to vector<5xf32>
    %90 = vector.shape_cast %89 : vector<5xf32> to vector<5x1xf32>
    %cst_44 = arith.constant 3.200000e+01 : f32
    %91 = vector.broadcast %cst_44 : f32 to vector<5x1xf32>
    %92 = arith.divf %90, %91 : vector<5x1xf32>
    %93 = vector.broadcast %92 : vector<5x1xf32> to vector<5x32xf32>
    %94 = arith.subf %84, %93 : vector<5x32xf32>
    %95 = arith.mulf %94, %94 : vector<5x32xf32>
    %cst_45 = arith.constant dense<0.000000e+00> : vector<5xf32>
    %96 = vector.multi_reduction <add>, %95, %cst_45 [1] : vector<5x32xf32> to vector<5xf32>
    %97 = vector.shape_cast %96 : vector<5xf32> to vector<5x1xf32>
    %cst_46 = arith.constant 3.200000e+01 : f32
    %98 = vector.broadcast %cst_46 : f32 to vector<5x1xf32>
    %99 = arith.divf %97, %98 : vector<5x1xf32>
    %100 = vector.broadcast %92 : vector<5x1xf32> to vector<5x32xf32>
    %101 = arith.subf %84, %100 : vector<5x32xf32>
    %cst_47 = arith.constant 9.99999974E-6 : f32
    %102 = vector.broadcast %cst_47 : f32 to vector<5x1xf32>
    %103 = arith.addf %99, %102 : vector<5x1xf32>
    %104 = math.rsqrt %103 : vector<5x1xf32>
    %105 = vector.broadcast %104 : vector<5x1xf32> to vector<5x32xf32>
    %106 = arith.mulf %101, %105 : vector<5x32xf32>
    %107 = vector.broadcast %86 : vector<1x32xf32> to vector<5x32xf32>
    %108 = arith.mulf %106, %107 : vector<5x32xf32>
    %109 = vector.broadcast %88 : vector<1x32xf32> to vector<5x32xf32>
    %110 = arith.addf %108, %109 : vector<5x32xf32>
    %c0_48 = arith.constant 0 : index
    %c0_49 = arith.constant 0 : index
    %c0_50 = arith.constant 0 : index
    %111 = vector.load %arg14[%c0_48, %c0_49, %c0_50] : memref<1x32x128xf32, #tpu.memory_space<vmem>>, vector<1x32x128xf32>
    %112 = vector.shape_cast %111 : vector<1x32x128xf32> to vector<32x128xf32>
    %cst_51 = arith.constant dense<0.000000e+00> : vector<5x128xf32>
    %113 = tpu.matmul %110, %112, %cst_51 {dimension_numbers = #tpu.dot_dimension_numbers<[1], [0], [0], [1], [0, 0, 1, 1], [], []>} : vector<5x32xf32>, vector<32x128xf32>, vector<5x128xf32> -> vector<5x128xf32>
    %c0_52 = arith.constant 0 : index
    %c0_53 = arith.constant 0 : index
    %c0_54 = arith.constant 0 : index
    %114 = vector.load %arg15[%c0_52, %c0_53, %c0_54] : memref<1x1x128xf32, #tpu.memory_space<vmem>>, vector<1x1x128xf32>
    %115 = vector.shape_cast %114 : vector<1x1x128xf32> to vector<1x128xf32>
    %116 = vector.broadcast %115 : vector<1x128xf32> to vector<5x128xf32>
    %117 = arith.addf %113, %116 : vector<5x128xf32>
    %cst_55 = arith.constant 5.000000e-01 : f32
    %118 = vector.broadcast %cst_55 : f32 to vector<5x128xf32>
    %119 = arith.mulf %118, %117 : vector<5x128xf32>
    %cst_56 = arith.constant 0.707106769 : f32
    %120 = vector.broadcast %cst_56 : f32 to vector<5x128xf32>
    %121 = arith.mulf %117, %120 : vector<5x128xf32>
    %122 = math.erf %121 : vector<5x128xf32>
    %cst_57 = arith.constant 1.000000e+00 : f32
    %123 = vector.broadcast %cst_57 : f32 to vector<5x128xf32>
    %124 = arith.addf %123, %122 : vector<5x128xf32>
    %125 = arith.mulf %119, %124 : vector<5x128xf32>
    %c0_58 = arith.constant 0 : index
    %c0_59 = arith.constant 0 : index
    %c0_60 = arith.constant 0 : index
    %126 = vector.load %arg16[%c0_58, %c0_59, %c0_60] : memref<1x128x32xf32, #tpu.memory_space<vmem>>, vector<1x128x32xf32>
    %127 = vector.shape_cast %126 : vector<1x128x32xf32> to vector<128x32xf32>
    %cst_61 = arith.constant dense<0.000000e+00> : vector<5x32xf32>
    %128 = tpu.matmul %125, %127, %cst_61 {dimension_numbers = #tpu.dot_dimension_numbers<[1], [0], [0], [1], [0, 0, 1, 1], [], []>} : vector<5x128xf32>, vector<128x32xf32>, vector<5x32xf32> -> vector<5x32xf32>
    %129 = arith.addf %84, %128 : vector<5x32xf32>
    %c0_62 = arith.constant 0 : index
    %c0_63 = arith.constant 0 : index
    %c0_64 = arith.constant 0 : index
    %130 = vector.load %arg17[%c0_62, %c0_63, %c0_64] : memref<1x1x32xf32, #tpu.memory_space<vmem>>, vector<1x1x32xf32>
    %131 = vector.shape_cast %130 : vector<1x1x32xf32> to vector<1x32xf32>
    %132 = vector.broadcast %131 : vector<1x32xf32> to vector<5x32xf32>
    %133 = arith.addf %129, %132 : vector<5x32xf32>
    %c0_65 = arith.constant 0 : index
    %c0_66 = arith.constant 0 : index
    %134 = vector.load %arg19[%c0_65, %c0_66] : memref<5x32xf32, #tpu.memory_space<vmem>>, vector<5x32xf32>
    tpu.vector_store %arg19[%c0_65, %c0_66], %133 {strides = array<i32>} : memref<5x32xf32, #tpu.memory_space<vmem>>, vector<5x32xf32>,
    %c1_i32 = arith.constant 1 : i32
    %135 = arith.cmpi eq, %arg1, %c1_i32 : i32
    %136 = arith.extui %135 : i1 to i32
    %c0_i32_67 = arith.constant 0 : i32
    %137 = arith.cmpi ne, %136, %c0_i32_67 : i32
    scf.if %137 {
      %c0_68 = arith.constant 0 : index
      %c0_69 = arith.constant 0 : index
      %c0_70 = arith.constant 0 : index
      %138 = vector.load %arg18[%c0_68, %c0_69, %c0_70] : memref<1x5x32xf32, #tpu.memory_space<vmem>>, vector<1x5x32xf32>
      %139 = vector.shape_cast %138 : vector<1x5x32xf32> to vector<5x32xf32>
      %140 = vector.shape_cast %133 : vector<5x32xf32> to vector<1x5x32xf32>
      tpu.vector_store %arg18[%c0_68, %c0_69, %c0_70], %140 {strides = array<i32>} : memref<1x5x32xf32, #tpu.memory_space<vmem>>, vector<1x5x32xf32>,
    } else {
    }
    return
  }
  func.func @transform_0(%arg0: i32, %arg1: i32) -> (i32, i32, i32) {
    %c0_i32 = arith.constant 0 : i32
    %c0_i32_0 = arith.constant 0 : i32
    %c0_i32_1 = arith.constant 0 : i32
    return %arg0, %c0_i32, %c0_i32_0 : i32, i32, i32
  }
  func.func @transform_1(%arg0: i32, %arg1: i32) -> (i32, i32) {
    %c0_i32 = arith.constant 0 : i32
    %c0_i32_0 = arith.constant 0 : i32
    %c0_i32_1 = arith.constant 0 : i32
    return %c0_i32, %c0_i32_0 : i32, i32
  }
  func.func @transform_2(%arg0: i32, %arg1: i32) -> (i32, i32) {
    %c0_i32 = arith.constant 0 : i32
    %c0_i32_0 = arith.constant 0 : i32
    %c0_i32_1 = arith.constant 0 : i32
    return %c0_i32, %c0_i32_0 : i32, i32
  }
  func.func @transform_3(%arg0: i32, %arg1: i32) -> (i32, i32) {
    %c0_i32 = arith.constant 0 : i32
    %c0_i32_0 = arith.constant 0 : i32
    %c0_i32_1 = arith.constant 0 : i32
    return %c0_i32, %c0_i32_0 : i32, i32
  }
  func.func @transform_4(%arg0: i32, %arg1: i32) -> (i32, i32, i32) {
    %c0_i32 = arith.constant 0 : i32
    %c0_i32_0 = arith.constant 0 : i32
    %c0_i32_1 = arith.constant 0 : i32
    return %arg1, %c0_i32, %c0_i32_0 : i32, i32, i32
  }
  func.func @transform_5(%arg0: i32, %arg1: i32) -> (i32, i32, i32) {
    %c0_i32 = arith.constant 0 : i32
    %c0_i32_0 = arith.constant 0 : i32
    %c0_i32_1 = arith.constant 0 : i32
    return %arg1, %c0_i32, %c0_i32_0 : i32, i32, i32
  }
  func.func @transform_6(%arg0: i32, %arg1: i32) -> (i32, i32, i32) {
    %c0_i32 = arith.constant 0 : i32
    %c0_i32_0 = arith.constant 0 : i32
    %c0_i32_1 = arith.constant 0 : i32
    return %arg1, %c0_i32, %c0_i32_0 : i32, i32, i32
  }
  func.func @transform_7(%arg0: i32, %arg1: i32) -> (i32, i32, i32) {
    %c0_i32 = arith.constant 0 : i32
    %c0_i32_0 = arith.constant 0 : i32
    %c0_i32_1 = arith.constant 0 : i32
    return %arg1, %c0_i32, %c0_i32_0 : i32, i32, i32
  }
  func.func @transform_8(%arg0: i32, %arg1: i32) -> (i32, i32, i32) {
    %c0_i32 = arith.constant 0 : i32
    %c0_i32_0 = arith.constant 0 : i32
    %c0_i32_1 = arith.constant 0 : i32
    return %arg1, %c0_i32, %c0_i32_0 : i32, i32, i32
  }
  func.func @transform_9(%arg0: i32, %arg1: i32) -> (i32, i32, i32) {
    %c0_i32 = arith.constant 0 : i32
    %c0_i32_0 = arith.constant 0 : i32
    %c0_i32_1 = arith.constant 0 : i32
    return %arg1, %c0_i32, %c0_i32_0 : i32, i32, i32
  }
  func.func @transform_10(%arg0: i32, %arg1: i32) -> (i32, i32, i32) {
    %c0_i32 = arith.constant 0 : i32
    %c0_i32_0 = arith.constant 0 : i32
    %c0_i32_1 = arith.constant 0 : i32
    return %arg1, %c0_i32, %c0_i32_0 : i32, i32, i32
  }
  func.func @transform_11(%arg0: i32, %arg1: i32) -> (i32, i32, i32) {
    %c0_i32 = arith.constant 0 : i32
    %c0_i32_0 = arith.constant 0 : i32
    %c0_i32_1 = arith.constant 0 : i32
    return %arg1, %c0_i32, %c0_i32_0 : i32, i32, i32
  }
  func.func @transform_12(%arg0: i32, %arg1: i32) -> (i32, i32, i32) {
    %c0_i32 = arith.constant 0 : i32
    %c0_i32_0 = arith.constant 0 : i32
    %c0_i32_1 = arith.constant 0 : i32
    return %arg1, %c0_i32, %c0_i32_0 : i32, i32, i32
  }
  func.func @transform_13(%arg0: i32, %arg1: i32) -> (i32, i32, i32) {
    %c0_i32 = arith.constant 0 : i32
    %c0_i32_0 = arith.constant 0 : i32
    %c0_i32_1 = arith.constant 0 : i32
    return %arg1, %c0_i32, %c0_i32_0 : i32, i32, i32
  }
  func.func @transform_14(%arg0: i32, %arg1: i32) -> (i32, i32, i32) {
    %c0_i32 = arith.constant 0 : i32
    %c0_i32_0 = arith.constant 0 : i32
    %c0_i32_1 = arith.constant 0 : i32
    return %arg1, %c0_i32, %c0_i32_0 : i32, i32, i32
  }
  func.func @transform_15(%arg0: i32, %arg1: i32) -> (i32, i32, i32) {
    %c0_i32 = arith.constant 0 : i32
    %c0_i32_0 = arith.constant 0 : i32
    %c0_i32_1 = arith.constant 0 : i32
    return %arg1, %c0_i32, %c0_i32_0 : i32, i32, i32
  }
  func.func @transform_16(%arg0: i32, %arg1: i32) -> (i32, i32, i32) {
    %c0_i32 = arith.constant 0 : i32
    %c0_i32_0 = arith.constant 0 : i32
    %c0_i32_1 = arith.constant 0 : i32
    return %arg0, %c0_i32, %c0_i32_0 : i32, i32, i32
  }
}

module attributes {stable_mosaic.version = 11 : i64} {
  func.func @_matmul_kernel(%arg0: memref<8x192xf32, #tpu.memory_space<vmem>>, %arg1: memref<192x32xf32, #tpu.memory_space<vmem>>, %arg2: memref<8x32xf32, #tpu.memory_space<vmem>>) attributes {dimension_semantics = [], scalar_prefetch = 0 : i64, scratch_operands = 0 : i64, tpu.core_type = #tpu.core_type<tc>} {
    %c0 = arith.constant 0 : index
    %c0_0 = arith.constant 0 : index
    %0 = vector.load %arg0[%c0, %c0_0] : memref<8x192xf32, #tpu.memory_space<vmem>>, vector<8x192xf32>
    %c0_1 = arith.constant 0 : index
    %c0_2 = arith.constant 0 : index
    %1 = vector.load %arg1[%c0_1, %c0_2] : memref<192x32xf32, #tpu.memory_space<vmem>>, vector<192x32xf32>
    %cst = arith.constant dense<0.000000e+00> : vector<8x32xf32>
    %2 = tpu.matmul %0, %1, %cst {dimension_numbers = #tpu.dot_dimension_numbers<[1], [0], [0], [1], [0, 0, 1, 1], [], []>} : vector<8x192xf32>, vector<192x32xf32>, vector<8x32xf32> -> vector<8x32xf32>
    %c0_3 = arith.constant 0 : index
    %c0_4 = arith.constant 0 : index
    %3 = vector.load %arg2[%c0_3, %c0_4] : memref<8x32xf32, #tpu.memory_space<vmem>>, vector<8x32xf32>
    tpu.vector_store %arg2[%c0_3, %c0_4], %2 {strides = array<i32>} : memref<8x32xf32, #tpu.memory_space<vmem>>, vector<8x32xf32>,
    return
  }
}

module attributes {stable_mosaic.version = 11 : i64} {
  func.func @_tower_kernel(%arg0: i32, %arg1: i32, %arg2: memref<1x8x32xf32, #tpu.memory_space<vmem>>, %arg3: memref<8x32xf32, #tpu.memory_space<vmem>>, %arg4: memref<1x1x32xf32, #tpu.memory_space<vmem>>, %arg5: memref<1x1x32xf32, #tpu.memory_space<vmem>>, %arg6: memref<1x32x96xf32, #tpu.memory_space<vmem>>, %arg7: memref<1x1x96xf32, #tpu.memory_space<vmem>>, %arg8: memref<1x32x32xf32, #tpu.memory_space<vmem>>, %arg9: memref<1x1x32xf32, #tpu.memory_space<vmem>>, %arg10: memref<1x1x32xf32, #tpu.memory_space<vmem>>, %arg11: memref<1x1x32xf32, #tpu.memory_space<vmem>>, %arg12: memref<1x32x128xf32, #tpu.memory_space<vmem>>, %arg13: memref<1x1x128xf32, #tpu.memory_space<vmem>>, %arg14: memref<1x128x32xf32, #tpu.memory_space<vmem>>, %arg15: memref<1x1x32xf32, #tpu.memory_space<vmem>>, %arg16: memref<1x8x32xf32, #tpu.memory_space<vmem>>, %arg17: memref<8x32xf32, #tpu.memory_space<vmem>>) attributes {dimension_semantics = [#tpu.dimension_semantics<parallel>, #tpu.dimension_semantics<arbitrary>], iteration_bounds = array<i64: 2, 2>, scalar_prefetch = 0 : i64, scratch_operands = 1 : i64, tpu.core_type = #tpu.core_type<tc>, window_params = [{transform_indices = @transform_0, window_bounds = array<i64: 1, 8, 32>}, {pipeline_mode = #tpu.pipeline_mode<synchronous>, transform_indices = @transform_1, window_bounds = array<i64: 8, 32>}, {transform_indices = @transform_2, window_bounds = array<i64: 1, 1, 32>}, {transform_indices = @transform_3, window_bounds = array<i64: 1, 1, 32>}, {transform_indices = @transform_4, window_bounds = array<i64: 1, 32, 96>}, {transform_indices = @transform_5, window_bounds = array<i64: 1, 1, 96>}, {transform_indices = @transform_6, window_bounds = array<i64: 1, 32, 32>}, {transform_indices = @transform_7, window_bounds = array<i64: 1, 1, 32>}, {transform_indices = @transform_8, window_bounds = array<i64: 1, 1, 32>}, {transform_indices = @transform_9, window_bounds = array<i64: 1, 1, 32>}, {transform_indices = @transform_10, window_bounds = array<i64: 1, 32, 128>}, {transform_indices = @transform_11, window_bounds = array<i64: 1, 1, 128>}, {transform_indices = @transform_12, window_bounds = array<i64: 1, 128, 32>}, {transform_indices = @transform_13, window_bounds = array<i64: 1, 1, 32>}, {transform_indices = @transform_14, window_bounds = array<i64: 1, 8, 32>}]} {
    %c0_i32 = arith.constant 0 : i32
    %0 = arith.cmpi eq, %arg1, %c0_i32 : i32
    %1 = arith.extui %0 : i1 to i32
    %c0_i32_0 = arith.constant 0 : i32
    %2 = arith.cmpi ne, %1, %c0_i32_0 : i32
    scf.if %2 {
      %c0_70 = arith.constant 0 : index
      %c0_71 = arith.constant 0 : index
      %c0_72 = arith.constant 0 : index
      %145 = vector.load %arg2[%c0_70, %c0_71, %c0_72] : memref<1x8x32xf32, #tpu.memory_space<vmem>>, vector<1x8x32xf32>
      %146 = vector.shape_cast %145 : vector<1x8x32xf32> to vector<8x32xf32>
      %c0_73 = arith.constant 0 : index
      %c0_74 = arith.constant 0 : index
      %147 = vector.load %arg3[%c0_73, %c0_74] : memref<8x32xf32, #tpu.memory_space<vmem>>, vector<8x32xf32>
      %148 = arith.addf %146, %147 : vector<8x32xf32>
      %c0_75 = arith.constant 0 : index
      %c0_76 = arith.constant 0 : index
      %149 = vector.load %arg17[%c0_75, %c0_76] : memref<8x32xf32, #tpu.memory_space<vmem>>, vector<8x32xf32>
      tpu.vector_store %arg17[%c0_75, %c0_76], %148 {strides = array<i32>} : memref<8x32xf32, #tpu.memory_space<vmem>>, vector<8x32xf32>,
    } else {
    }
    %c0 = arith.constant 0 : index
    %c0_1 = arith.constant 0 : index
    %3 = vector.load %arg17[%c0, %c0_1] : memref<8x32xf32, #tpu.memory_space<vmem>>, vector<8x32xf32>
    %c0_2 = arith.constant 0 : index
    %c0_3 = arith.constant 0 : index
    %c0_4 = arith.constant 0 : index
    %4 = vector.load %arg4[%c0_2, %c0_3, %c0_4] : memref<1x1x32xf32, #tpu.memory_space<vmem>>, vector<1x1x32xf32>
    %5 = vector.shape_cast %4 : vector<1x1x32xf32> to vector<1x32xf32>
    %c0_5 = arith.constant 0 : index
    %c0_6 = arith.constant 0 : index
    %c0_7 = arith.constant 0 : index
    %6 = vector.load %arg5[%c0_5, %c0_6, %c0_7] : memref<1x1x32xf32, #tpu.memory_space<vmem>>, vector<1x1x32xf32>
    %7 = vector.shape_cast %6 : vector<1x1x32xf32> to vector<1x32xf32>
    %cst = arith.constant dense<0.000000e+00> : vector<8xf32>
    %8 = vector.multi_reduction <add>, %3, %cst [1] : vector<8x32xf32> to vector<8xf32>
    %9 = vector.shape_cast %8 : vector<8xf32> to vector<8x1xf32>
    %cst_8 = arith.constant 3.200000e+01 : f32
    %10 = vector.broadcast %cst_8 : f32 to vector<8x1xf32>
    %11 = arith.divf %9, %10 : vector<8x1xf32>
    %12 = vector.broadcast %11 : vector<8x1xf32> to vector<8x32xf32>
    %13 = arith.subf %3, %12 : vector<8x32xf32>
    %14 = arith.mulf %13, %13 : vector<8x32xf32>
    %cst_9 = arith.constant dense<0.000000e+00> : vector<8xf32>
    %15 = vector.multi_reduction <add>, %14, %cst_9 [1] : vector<8x32xf32> to vector<8xf32>
    %16 = vector.shape_cast %15 : vector<8xf32> to vector<8x1xf32>
    %cst_10 = arith.constant 3.200000e+01 : f32
    %17 = vector.broadcast %cst_10 : f32 to vector<8x1xf32>
    %18 = arith.divf %16, %17 : vector<8x1xf32>
    %19 = vector.broadcast %11 : vector<8x1xf32> to vector<8x32xf32>
    %20 = arith.subf %3, %19 : vector<8x32xf32>
    %cst_11 = arith.constant 9.99999974E-6 : f32
    %21 = vector.broadcast %cst_11 : f32 to vector<8x1xf32>
    %22 = arith.addf %18, %21 : vector<8x1xf32>
    %23 = math.rsqrt %22 : vector<8x1xf32>
    %24 = vector.broadcast %23 : vector<8x1xf32> to vector<8x32xf32>
    %25 = arith.mulf %20, %24 : vector<8x32xf32>
    %26 = vector.broadcast %5 : vector<1x32xf32> to vector<8x32xf32>
    %27 = arith.mulf %25, %26 : vector<8x32xf32>
    %28 = vector.broadcast %7 : vector<1x32xf32> to vector<8x32xf32>
    %29 = arith.addf %27, %28 : vector<8x32xf32>
    %c0_12 = arith.constant 0 : index
    %c0_13 = arith.constant 0 : index
    %c0_14 = arith.constant 0 : index
    %30 = vector.load %arg6[%c0_12, %c0_13, %c0_14] : memref<1x32x96xf32, #tpu.memory_space<vmem>>, vector<1x32x96xf32>
    %31 = vector.shape_cast %30 : vector<1x32x96xf32> to vector<32x96xf32>
    %cst_15 = arith.constant dense<0.000000e+00> : vector<8x96xf32>
    %32 = tpu.matmul %29, %31, %cst_15 {dimension_numbers = #tpu.dot_dimension_numbers<[1], [0], [0], [1], [0, 0, 1, 1], [], []>} : vector<8x32xf32>, vector<32x96xf32>, vector<8x96xf32> -> vector<8x96xf32>
    %c0_16 = arith.constant 0 : index
    %c0_17 = arith.constant 0 : index
    %c0_18 = arith.constant 0 : index
    %33 = vector.load %arg7[%c0_16, %c0_17, %c0_18] : memref<1x1x96xf32, #tpu.memory_space<vmem>>, vector<1x1x96xf32>
    %34 = vector.shape_cast %33 : vector<1x1x96xf32> to vector<1x96xf32>
    %35 = vector.broadcast %34 : vector<1x96xf32> to vector<8x96xf32>
    %36 = arith.addf %32, %35 : vector<8x96xf32>
    %37 = tpu.iota {dimensions = array<i32: 0>} : vector<8x8xi32>
    %38 = tpu.iota {dimensions = array<i32: 1>} : vector<8x8xi32>
    %39 = arith.cmpi sle, %38, %37 : vector<8x8xi32>
    %c0_19 = arith.constant 0 : index
    %c0_20 = arith.constant 0 : index
    %c0_21 = arith.constant 0 : index
    %40 = vector.load %arg8[%c0_19, %c0_20, %c0_21] : memref<1x32x32xf32, #tpu.memory_space<vmem>>, vector<1x32x32xf32>
    %41 = vector.shape_cast %40 : vector<1x32x32xf32> to vector<32x32xf32>
    %c0_22 = arith.constant 0 : index
    %c0_23 = arith.constant 0 : index
    %c0_24 = arith.constant 0 : index
    %42 = vector.load %arg9[%c0_22, %c0_23, %c0_24] : memref<1x1x32xf32, #tpu.memory_space<vmem>>, vector<1x1x32xf32>
    %43 = vector.shape_cast %42 : vector<1x1x32xf32> to vector<1x32xf32>
    %44 = vector.extract_strided_slice %36 {offsets = [0, 0], sizes = [8, 16], strides = [1, 1]} : vector<8x96xf32> to vector<8x16xf32>
    %cst_25 = arith.constant 2.500000e-01 : f32
    %45 = vector.broadcast %cst_25 : f32 to vector<8x16xf32>
    %46 = arith.mulf %44, %45 : vector<8x16xf32>
    %47 = vector.extract_strided_slice %36 {offsets = [0, 32], sizes = [8, 16], strides = [1, 1]} : vector<8x96xf32> to vector<8x16xf32>
    %48 = vector.extract_strided_slice %36 {offsets = [0, 64], sizes = [8, 16], strides = [1, 1]} : vector<8x96xf32> to vector<8x16xf32>
    %49 = tpu.transpose %47, [1, 0] : vector<8x16xf32> -> vector<16x8xf32>
    %cst_26 = arith.constant dense<0.000000e+00> : vector<8x8xf32>
    %50 = tpu.matmul %46, %49, %cst_26 {dimension_numbers = #tpu.dot_dimension_numbers<[1], [0], [0], [1], [0, 0, 1, 1], [], []>} : vector<8x16xf32>, vector<16x8xf32>, vector<8x8xf32> -> vector<8x8xf32>
    %cst_27 = arith.constant 0xFF800000 : f32
    %51 = vector.broadcast %cst_27 : f32 to vector<8x8xf32>
    %52 = arith.select %39, %50, %51 : vector<8x8xi1>, vector<8x8xf32>
    %cst_28 = arith.constant dense<0xFF800000> : vector<8xf32>
    %53 = vector.multi_reduction <maximumf>, %52, %cst_28 [1] : vector<8x8xf32> to vector<8xf32>
    %54 = vector.shape_cast %53 : vector<8xf32> to vector<8x1xf32>
    %55 = vector.broadcast %54 : vector<8x1xf32> to vector<8x8xf32>
    %56 = arith.subf %52, %55 : vector<8x8xf32>
    %57 = math.exp %56 : vector<8x8xf32>
    %cst_29 = arith.constant dense<0.000000e+00> : vector<8xf32>
    %58 = vector.multi_reduction <add>, %57, %cst_29 [1] : vector<8x8xf32> to vector<8xf32>
    %59 = vector.shape_cast %58 : vector<8xf32> to vector<8x1xf32>
    %60 = tpu.reciprocal %59 {approx = true} : vector<8x1xf32> -> vector<8x1xf32>
    %61 = vector.broadcast %60 : vector<8x1xf32> to vector<8x8xf32>
    %62 = arith.mulf %57, %61 : vector<8x8xf32>
    %cst_30 = arith.constant dense<0.000000e+00> : vector<8x16xf32>
    %63 = tpu.matmul %62, %48, %cst_30 {dimension_numbers = #tpu.dot_dimension_numbers<[1], [0], [0], [1], [0, 0, 1, 1], [], []>} : vector<8x8xf32>, vector<8x16xf32>, vector<8x16xf32> -> vector<8x16xf32>
    %64 = vector.extract_strided_slice %41 {offsets = [0, 0], sizes = [16, 32], strides = [1, 1]} : vector<32x32xf32> to vector<16x32xf32>
    %cst_31 = arith.constant dense<0.000000e+00> : vector<8x32xf32>
    %65 = tpu.matmul %63, %64, %cst_31 {dimension_numbers = #tpu.dot_dimension_numbers<[1], [0], [0], [1], [0, 0, 1, 1], [], []>} : vector<8x16xf32>, vector<16x32xf32>, vector<8x32xf32> -> vector<8x32xf32>
    %66 = vector.broadcast %43 : vector<1x32xf32> to vector<8x32xf32>
    %67 = arith.addf %66, %65 : vector<8x32xf32>
    %68 = vector.extract_strided_slice %36 {offsets = [0, 16], sizes = [8, 16], strides = [1, 1]} : vector<8x96xf32> to vector<8x16xf32>
    %cst_32 = arith.constant 2.500000e-01 : f32
    %69 = vector.broadcast %cst_32 : f32 to vector<8x16xf32>
    %70 = arith.mulf %68, %69 : vector<8x16xf32>
    %71 = vector.extract_strided_slice %36 {offsets = [0, 48], sizes = [8, 16], strides = [1, 1]} : vector<8x96xf32> to vector<8x16xf32>
    %72 = vector.extract_strided_slice %36 {offsets = [0, 80], sizes = [8, 16], strides = [1, 1]} : vector<8x96xf32> to vector<8x16xf32>
    %73 = tpu.transpose %71, [1, 0] : vector<8x16xf32> -> vector<16x8xf32>
    %cst_33 = arith.constant dense<0.000000e+00> : vector<8x8xf32>
    %74 = tpu.matmul %70, %73, %cst_33 {dimension_numbers = #tpu.dot_dimension_numbers<[1], [0], [0], [1], [0, 0, 1, 1], [], []>} : vector<8x16xf32>, vector<16x8xf32>, vector<8x8xf32> -> vector<8x8xf32>
    %cst_34 = arith.constant 0xFF800000 : f32
    %75 = vector.broadcast %cst_34 : f32 to vector<8x8xf32>
    %76 = arith.select %39, %74, %75 : vector<8x8xi1>, vector<8x8xf32>
    %cst_35 = arith.constant dense<0xFF800000> : vector<8xf32>
    %77 = vector.multi_reduction <maximumf>, %76, %cst_35 [1] : vector<8x8xf32> to vector<8xf32>
    %78 = vector.shape_cast %77 : vector<8xf32> to vector<8x1xf32>
    %79 = vector.broadcast %78 : vector<8x1xf32> to vector<8x8xf32>
    %80 = arith.subf %76, %79 : vector<8x8xf32>
    %81 = math.exp %80 : vector<8x8xf32>
    %cst_36 = arith.constant dense<0.000000e+00> : vector<8xf32>
    %82 = vector.multi_reduction <add>, %81, %cst_36 [1] : vector<8x8xf32> to vector<8xf32>
    %83 = vector.shape_cast %82 : vector<8xf32> to vector<8x1xf32>
    %84 = tpu.reciprocal %83 {approx = true} : vector<8x1xf32> -> vector<8x1xf32>
    %85 = vector.broadcast %84 : vector<8x1xf32> to vector<8x8xf32>
    %86 = arith.mulf %81, %85 : vector<8x8xf32>
    %cst_37 = arith.constant dense<0.000000e+00> : vector<8x16xf32>
    %87 = tpu.matmul %86, %72, %cst_37 {dimension_numbers = #tpu.dot_dimension_numbers<[1], [0], [0], [1], [0, 0, 1, 1], [], []>} : vector<8x8xf32>, vector<8x16xf32>, vector<8x16xf32> -> vector<8x16xf32>
    %88 = vector.extract_strided_slice %41 {offsets = [16, 0], sizes = [16, 32], strides = [1, 1]} : vector<32x32xf32> to vector<16x32xf32>
    %cst_38 = arith.constant dense<0.000000e+00> : vector<8x32xf32>
    %89 = tpu.matmul %87, %88, %cst_38 {dimension_numbers = #tpu.dot_dimension_numbers<[1], [0], [0], [1], [0, 0, 1, 1], [], []>} : vector<8x16xf32>, vector<16x32xf32>, vector<8x32xf32> -> vector<8x32xf32>
    %90 = arith.addf %67, %89 : vector<8x32xf32>
    %91 = arith.addf %3, %90 : vector<8x32xf32>
    %c0_39 = arith.constant 0 : index
    %c0_40 = arith.constant 0 : index
    %c0_41 = arith.constant 0 : index
    %92 = vector.load %arg10[%c0_39, %c0_40, %c0_41] : memref<1x1x32xf32, #tpu.memory_space<vmem>>, vector<1x1x32xf32>
    %93 = vector.shape_cast %92 : vector<1x1x32xf32> to vector<1x32xf32>
    %c0_42 = arith.constant 0 : index
    %c0_43 = arith.constant 0 : index
    %c0_44 = arith.constant 0 : index
    %94 = vector.load %arg11[%c0_42, %c0_43, %c0_44] : memref<1x1x32xf32, #tpu.memory_space<vmem>>, vector<1x1x32xf32>
    %95 = vector.shape_cast %94 : vector<1x1x32xf32> to vector<1x32xf32>
    %cst_45 = arith.constant dense<0.000000e+00> : vector<8xf32>
    %96 = vector.multi_reduction <add>, %91, %cst_45 [1] : vector<8x32xf32> to vector<8xf32>
    %97 = vector.shape_cast %96 : vector<8xf32> to vector<8x1xf32>
    %cst_46 = arith.constant 3.200000e+01 : f32
    %98 = vector.broadcast %cst_46 : f32 to vector<8x1xf32>
    %99 = arith.divf %97, %98 : vector<8x1xf32>
    %100 = vector.broadcast %99 : vector<8x1xf32> to vector<8x32xf32>
    %101 = arith.subf %91, %100 : vector<8x32xf32>
    %102 = arith.mulf %101, %101 : vector<8x32xf32>
    %cst_47 = arith.constant dense<0.000000e+00> : vector<8xf32>
    %103 = vector.multi_reduction <add>, %102, %cst_47 [1] : vector<8x32xf32> to vector<8xf32>
    %104 = vector.shape_cast %103 : vector<8xf32> to vector<8x1xf32>
    %cst_48 = arith.constant 3.200000e+01 : f32
    %105 = vector.broadcast %cst_48 : f32 to vector<8x1xf32>
    %106 = arith.divf %104, %105 : vector<8x1xf32>
    %107 = vector.broadcast %99 : vector<8x1xf32> to vector<8x32xf32>
    %108 = arith.subf %91, %107 : vector<8x32xf32>
    %cst_49 = arith.constant 9.99999974E-6 : f32
    %109 = vector.broadcast %cst_49 : f32 to vector<8x1xf32>
    %110 = arith.addf %106, %109 : vector<8x1xf32>
    %111 = math.rsqrt %110 : vector<8x1xf32>
    %112 = vector.broadcast %111 : vector<8x1xf32> to vector<8x32xf32>
    %113 = arith.mulf %108, %112 : vector<8x32xf32>
    %114 = vector.broadcast %93 : vector<1x32xf32> to vector<8x32xf32>
    %115 = arith.mulf %113, %114 : vector<8x32xf32>
    %116 = vector.broadcast %95 : vector<1x32xf32> to vector<8x32xf32>
    %117 = arith.addf %115, %116 : vector<8x32xf32>
    %c0_50 = arith.constant 0 : index
    %c0_51 = arith.constant 0 : index
    %c0_52 = arith.constant 0 : index
    %118 = vector.load %arg12[%c0_50, %c0_51, %c0_52] : memref<1x32x128xf32, #tpu.memory_space<vmem>>, vector<1x32x128xf32>
    %119 = vector.shape_cast %118 : vector<1x32x128xf32> to vector<32x128xf32>
    %cst_53 = arith.constant dense<0.000000e+00> : vector<8x128xf32>
    %120 = tpu.matmul %117, %119, %cst_53 {dimension_numbers = #tpu.dot_dimension_numbers<[1], [0], [0], [1], [0, 0, 1, 1], [], []>} : vector<8x32xf32>, vector<32x128xf32>, vector<8x128xf32> -> vector<8x128xf32>
    %c0_54 = arith.constant 0 : index
    %c0_55 = arith.constant 0 : index
    %c0_56 = arith.constant 0 : index
    %121 = vector.load %arg13[%c0_54, %c0_55, %c0_56] : memref<1x1x128xf32, #tpu.memory_space<vmem>>, vector<1x1x128xf32>
    %122 = vector.shape_cast %121 : vector<1x1x128xf32> to vector<1x128xf32>
    %123 = vector.broadcast %122 : vector<1x128xf32> to vector<8x128xf32>
    %124 = arith.addf %120, %123 : vector<8x128xf32>
    %cst_57 = arith.constant 5.000000e-01 : f32
    %125 = vector.broadcast %cst_57 : f32 to vector<8x128xf32>
    %126 = arith.mulf %125, %124 : vector<8x128xf32>
    %cst_58 = arith.constant 0.707106769 : f32
    %127 = vector.broadcast %cst_58 : f32 to vector<8x128xf32>
    %128 = arith.mulf %124, %127 : vector<8x128xf32>
    %129 = math.erf %128 : vector<8x128xf32>
    %cst_59 = arith.constant 1.000000e+00 : f32
    %130 = vector.broadcast %cst_59 : f32 to vector<8x128xf32>
    %131 = arith.addf %130, %129 : vector<8x128xf32>
    %132 = arith.mulf %126, %131 : vector<8x128xf32>
    %c0_60 = arith.constant 0 : index
    %c0_61 = arith.constant 0 : index
    %c0_62 = arith.constant 0 : index
    %133 = vector.load %arg14[%c0_60, %c0_61, %c0_62] : memref<1x128x32xf32, #tpu.memory_space<vmem>>, vector<1x128x32xf32>
    %134 = vector.shape_cast %133 : vector<1x128x32xf32> to vector<128x32xf32>
    %cst_63 = arith.constant dense<0.000000e+00> : vector<8x32xf32>
    %135 = tpu.matmul %132, %134, %cst_63 {dimension_numbers = #tpu.dot_dimension_numbers<[1], [0], [0], [1], [0, 0, 1, 1], [], []>} : vector<8x128xf32>, vector<128x32xf32>, vector<8x32xf32> -> vector<8x32xf32>
    %136 = arith.addf %91, %135 : vector<8x32xf32>
    %c0_64 = arith.constant 0 : index
    %c0_65 = arith.constant 0 : index
    %c0_66 = arith.constant 0 : index
    %137 = vector.load %arg15[%c0_64, %c0_65, %c0_66] : memref<1x1x32xf32, #tpu.memory_space<vmem>>, vector<1x1x32xf32>
    %138 = vector.shape_cast %137 : vector<1x1x32xf32> to vector<1x32xf32>
    %139 = vector.broadcast %138 : vector<1x32xf32> to vector<8x32xf32>
    %140 = arith.addf %136, %139 : vector<8x32xf32>
    %c0_67 = arith.constant 0 : index
    %c0_68 = arith.constant 0 : index
    %141 = vector.load %arg17[%c0_67, %c0_68] : memref<8x32xf32, #tpu.memory_space<vmem>>, vector<8x32xf32>
    tpu.vector_store %arg17[%c0_67, %c0_68], %140 {strides = array<i32>} : memref<8x32xf32, #tpu.memory_space<vmem>>, vector<8x32xf32>,
    %c1_i32 = arith.constant 1 : i32
    %142 = arith.cmpi eq, %arg1, %c1_i32 : i32
    %143 = arith.extui %142 : i1 to i32
    %c0_i32_69 = arith.constant 0 : i32
    %144 = arith.cmpi ne, %143, %c0_i32_69 : i32
    scf.if %144 {
      %c0_70 = arith.constant 0 : index
      %c0_71 = arith.constant 0 : index
      %c0_72 = arith.constant 0 : index
      %145 = vector.load %arg16[%c0_70, %c0_71, %c0_72] : memref<1x8x32xf32, #tpu.memory_space<vmem>>, vector<1x8x32xf32>
      %146 = vector.shape_cast %145 : vector<1x8x32xf32> to vector<8x32xf32>
      %147 = vector.shape_cast %140 : vector<8x32xf32> to vector<1x8x32xf32>
      tpu.vector_store %arg16[%c0_70, %c0_71, %c0_72], %147 {strides = array<i32>} : memref<1x8x32xf32, #tpu.memory_space<vmem>>, vector<1x8x32xf32>,
    } else {
    }
    return
  }
  func.func @transform_0(%arg0: i32, %arg1: i32) -> (i32, i32, i32) {
    %c0_i32 = arith.constant 0 : i32
    %c0_i32_0 = arith.constant 0 : i32
    %c0_i32_1 = arith.constant 0 : i32
    return %arg0, %c0_i32, %c0_i32_0 : i32, i32, i32
  }
  func.func @transform_1(%arg0: i32, %arg1: i32) -> (i32, i32) {
    %c0_i32 = arith.constant 0 : i32
    %c0_i32_0 = arith.constant 0 : i32
    %c0_i32_1 = arith.constant 0 : i32
    return %c0_i32, %c0_i32_0 : i32, i32
  }
  func.func @transform_2(%arg0: i32, %arg1: i32) -> (i32, i32, i32) {
    %c0_i32 = arith.constant 0 : i32
    %c0_i32_0 = arith.constant 0 : i32
    %c0_i32_1 = arith.constant 0 : i32
    return %arg1, %c0_i32, %c0_i32_0 : i32, i32, i32
  }
  func.func @transform_3(%arg0: i32, %arg1: i32) -> (i32, i32, i32) {
    %c0_i32 = arith.constant 0 : i32
    %c0_i32_0 = arith.constant 0 : i32
    %c0_i32_1 = arith.constant 0 : i32
    return %arg1, %c0_i32, %c0_i32_0 : i32, i32, i32
  }
  func.func @transform_4(%arg0: i32, %arg1: i32) -> (i32, i32, i32) {
    %c0_i32 = arith.constant 0 : i32
    %c0_i32_0 = arith.constant 0 : i32
    %c0_i32_1 = arith.constant 0 : i32
    return %arg1, %c0_i32, %c0_i32_0 : i32, i32, i32
  }
  func.func @transform_5(%arg0: i32, %arg1: i32) -> (i32, i32, i32) {
    %c0_i32 = arith.constant 0 : i32
    %c0_i32_0 = arith.constant 0 : i32
    %c0_i32_1 = arith.constant 0 : i32
    return %arg1, %c0_i32, %c0_i32_0 : i32, i32, i32
  }
  func.func @transform_6(%arg0: i32, %arg1: i32) -> (i32, i32, i32) {
    %c0_i32 = arith.constant 0 : i32
    %c0_i32_0 = arith.constant 0 : i32
    %c0_i32_1 = arith.constant 0 : i32
    return %arg1, %c0_i32, %c0_i32_0 : i32, i32, i32
  }
  func.func @transform_7(%arg0: i32, %arg1: i32) -> (i32, i32, i32) {
    %c0_i32 = arith.constant 0 : i32
    %c0_i32_0 = arith.constant 0 : i32
    %c0_i32_1 = arith.constant 0 : i32
    return %arg1, %c0_i32, %c0_i32_0 : i32, i32, i32
  }
  func.func @transform_8(%arg0: i32, %arg1: i32) -> (i32, i32, i32) {
    %c0_i32 = arith.constant 0 : i32
    %c0_i32_0 = arith.constant 0 : i32
    %c0_i32_1 = arith.constant 0 : i32
    return %arg1, %c0_i32, %c0_i32_0 : i32, i32, i32
  }
  func.func @transform_9(%arg0: i32, %arg1: i32) -> (i32, i32, i32) {
    %c0_i32 = arith.constant 0 : i32
    %c0_i32_0 = arith.constant 0 : i32
    %c0_i32_1 = arith.constant 0 : i32
    return %arg1, %c0_i32, %c0_i32_0 : i32, i32, i32
  }
  func.func @transform_10(%arg0: i32, %arg1: i32) -> (i32, i32, i32) {
    %c0_i32 = arith.constant 0 : i32
    %c0_i32_0 = arith.constant 0 : i32
    %c0_i32_1 = arith.constant 0 : i32
    return %arg1, %c0_i32, %c0_i32_0 : i32, i32, i32
  }
  func.func @transform_11(%arg0: i32, %arg1: i32) -> (i32, i32, i32) {
    %c0_i32 = arith.constant 0 : i32
    %c0_i32_0 = arith.constant 0 : i32
    %c0_i32_1 = arith.constant 0 : i32
    return %arg1, %c0_i32, %c0_i32_0 : i32, i32, i32
  }
  func.func @transform_12(%arg0: i32, %arg1: i32) -> (i32, i32, i32) {
    %c0_i32 = arith.constant 0 : i32
    %c0_i32_0 = arith.constant 0 : i32
    %c0_i32_1 = arith.constant 0 : i32
    return %arg1, %c0_i32, %c0_i32_0 : i32, i32, i32
  }
  func.func @transform_13(%arg0: i32, %arg1: i32) -> (i32, i32, i32) {
    %c0_i32 = arith.constant 0 : i32
    %c0_i32_0 = arith.constant 0 : i32
    %c0_i32_1 = arith.constant 0 : i32
    return %arg1, %c0_i32, %c0_i32_0 : i32, i32, i32
  }
  func.func @transform_14(%arg0: i32, %arg1: i32) -> (i32, i32, i32) {
    %c0_i32 = arith.constant 0 : i32
    %c0_i32_0 = arith.constant 0 : i32
    %c0_i32_1 = arith.constant 0 : i32
    return %arg0, %c0_i32, %c0_i32_0 : i32, i32, i32
  }
}

</mosaic_0001>

<bundles_post_ra>
// kernel: clip_forward.7
= control target key start
LH: loop header
LB: loop body
LE: loop exit
PB: predicated region body
PF: predicated region fallthrough
CT: control target
= control target key end

     0   :  { %vm20_vm0 = vcmask 254976   ;;  %v99_v2 = vmov 32.0   ;;  %vm62_vm5 = vcmask 261120   ;;  %s152_s0 = inlined_call_operand.vmem [shape: f32[2,32], index: 0, kind: input, shape index: {}]   ;;  %s153_s1 = inlined_call_operand.vmem [shape: f32[1,32], index: 1, kind: input, shape index: {}]   ;;  %s154_s2 = inlined_call_operand.vmem [shape: f32[1,32], index: 2, kind: input, shape index: {}]   ;;  %s155_s3 = inlined_call_operand.vmem [shape: f32[32,32], index: 3, kind: input, shape index: {}]   ;;  %s156_s4 = inlined_call_operand.vmem [shape: f32[2,32], index: 4, kind: output, shape index: {}]  }
   0x1   :  { %v17_v0 = vld [vmem:[%s152_s0] sm:$0x3]  ;;  %95 = vrcp.f32 %v99_v2  ;;  %v61_v14 = vld [vmem:[%s155_s3 + $0x18] sm:$0xff]  ;;  %v60_v15 = vld [vmem:[%s155_s3 + $0x10] sm:$0xff] }
   0x2   :  { %v21_v1 = vsel %vm20_vm0, %v17_v0, 0.0  ;;  %78 = vmatpush.msra.mxu0 %v61_v14  ;;  %v59_v16 = vld [vmem:[%s155_s3 + $0x8] sm:$0xff]  ;;  %v58_v17 = vld [vmem:[%s155_s3] sm:$0xff] }
   0x3   :  { %22 = vadd.xlane.f32.xlu0 %v21_v1  ;;  %v93_v27 = vld [vmem:[%s153_s1] ss:$0 sm:$0xff] }
   0x4   :  { %79 = vmatpush.msra.mxu0 %v60_v15  ;;  %v94_v30 = vld [vmem:[%s154_s2] ss:$0 sm:$0xff] }
   0x6   :  { %80 = vmatpush.msra.mxu0 %v59_v16 }
   0x7   :  { %v96_v3 = vpop.eup %95 }
   0x8   :  { %v25_v4 = vmul.f32 32.0, %v96_v3  ;;  %vm29_vm1 = vweird.f32 %v96_v3  ;;  %81 = vmatpush.msra.mxu0 %v58_v17 }
   0xa   :  { %v26_v5 = vsub.f32 1.0, %v25_v4 }
   0xc   :  { %v27_v6 = vmul.f32 %v96_v3, %v26_v5 }
   0xe   :  { %v28_v7 = vadd.f32 %v96_v3, %v27_v6 }
  0x10   :  { %v30_v8 = vsel %vm29_vm1, %v96_v3, %v28_v7 }
  0x76   :  { %v23_v9 = vpop.xlane.xlu0 %22 }
  0x77   :  { %v31_v10 = vmul.f32 %v30_v8, %v23_v9 }
  0x79   :  { %v32_v11 = vsub.f32 %v17_v0, %v31_v10 }
  0x7b   :  { %v33_v12 = vmul.f32 %v32_v11, %v32_v11 }
  0x7d   :  { %v34_v13 = vsel %vm20_vm0, %v33_v12, 0.0 }
  0x7e   :  { %35 = vadd.xlane.f32.xlu0 %v34_v13 }
  0xf1   :  { %v36_v18 = vpop.xlane.xlu0 %35 }
  0xf2   :  { %v37_v19 = vmul.f32 %v36_v18, %v30_v8 }
  0xf4   :  { %v38_v20 = vadd.f32 1e-05, %v37_v19 }
  0xf6   :  { %97 = vrsqrt.f32 %v38_v20  ;;  %vm45_vm3 = vweird.f32 %v38_v20 }
  0xfc   :  { %v98_v21 = vpop.eup %97 }
  0xfd   :  { %v40_v22 = vmul.f32 %v98_v21, %v38_v20  ;;  %vm46_vm2 = vweird.f32 %v98_v21 }
  0xfe   :  { %vm47_vm4 = vmor %vm45_vm3, %vm46_vm2 }
  0xff   :  { %v41_v23 = vmul.f32 %v98_v21, %v40_v22 }
 0x101   :  { %v42_v24 = vmul.f32 0.5, %v41_v23 }
 0x103   :  { %v43_v25 = vsub.f32 1.5, %v42_v24 }
 0x105   :  { %v44_v26 = vmul.f32 %v98_v21, %v43_v25 }
 0x107   :  { %v48_v28 = vsel %vm47_vm4, %v98_v21, %v44_v26 }
 0x108   :  { %v49_v29 = vmul.f32 %v48_v28, %v32_v11 }
 0x10a   :  { %v53_v31 = vmul.f32 %v93_v27, %v49_v29 }
 0x10c   :  { %v57_v32 = vadd.f32 %v94_v30, %v53_v31 }
 0x10e   :  { %91 = vmatmul.msk.f32.vlgmr.msra.gmra.mxu0 %vm62_vm5, %v57_v32 }
 0x18b   :  { %v83_v33 = vpop.f32.mrf.mxu0 }
 0x18c   :  { %86 = vst.msk [vmem:[%s156_s4] sm:$0x3] %vm20_vm0, %v83_v33 }

// kernel: clip_forward.5
= control target key start
LH: loop header
LB: loop body
LE: loop exit
PB: predicated region body
PF: predicated region fallthrough
CT: control target
= control target key end

     0   :  { %vm37_vm0 = vcmask 523264   ;;  %vm81_vm1 = vcmask 261120   ;;  %s184_s1 = inlined_call_operand.vmem [shape: f32[192,32], index: 1, kind: input, shape index: {}]   ;;  %s185_s0 = inlined_call_operand.vmem [shape: f32[8,192], index: 0, kind: input, shape index: {}]   ;;  %s186_s2 = inlined_call_operand.vmem [shape: f32[8,32], index: 2, kind: output, shape index: {}]  }
   0x1   :  { %v28_v0 = vld [vmem:[%s184_s1 + $0x78] sm:$0xff]  ;;  %v27_v1 = vld [vmem:[%s184_s1 + $0x70] sm:$0xff]  ;;  %v26_v2 = vld [vmem:[%s184_s1 + $0x68] sm:$0xff] }
   0x2   :  { %41 = vmatpush.msra.mxu0 %v28_v0  ;;  %v36_v3 = vld [vmem:[%s184_s1 + $0xb8] sm:$0xff]  ;;  %v35_v4 = vld [vmem:[%s184_s1 + $0xb0] sm:$0xff]  ;;  %v25_v5 = vld [vmem:[%s184_s1 + $0x60] sm:$0xff] }
   0x3   :  { %69 = vmatpush.msra.mxu1 %v36_v3  ;;  %v34_v6 = vld [vmem:[%s184_s1 + $0xa8] sm:$0xff]  ;;  %v24_v7 = vld [vmem:[%s184_s1 + $0x58] sm:$0xff]  ;;  %v33_v8 = vld [vmem:[%s184_s1 + $0xa0] sm:$0xff] }
   0x4   :  { %42 = vmatpush.msra.mxu0 %v27_v1  ;;  %v23_v9 = vld [vmem:[%s184_s1 + $0x50] sm:$0xff]  ;;  %v32_v10 = vld [vmem:[%s184_s1 + $0x98] sm:$0xff]  ;;  %v22_v11 = vld [vmem:[%s184_s1 + $0x48] sm:$0xff] }
   0x5   :  { %70 = vmatpush.msra.mxu1 %v35_v4  ;;  %v31_v12 = vld [vmem:[%s184_s1 + $0x90] sm:$0xff]  ;;  %v21_v13 = vld [vmem:[%s184_s1 + $0x40] sm:$0xff]  ;;  %v30_v14 = vld [vmem:[%s184_s1 + $0x88] sm:$0xff] }
   0x6   :  { %43 = vmatpush.msra.mxu0 %v26_v2  ;;  %v20_v15 = vld [vmem:[%s184_s1 + $0x38] sm:$0xff]  ;;  %v29_v16 = vld [vmem:[%s184_s1 + $0x80] sm:$0xff]  ;;  %v19_v17 = vld [vmem:[%s184_s1 + $0x30] sm:$0xff] }
   0x7   :  { %71 = vmatpush.msra.mxu1 %v34_v6  ;;  %v12_v18 = vld [vmem:[%s185_s0 + $0x8] sm:$0xff]  ;;  %v17_v20 = vld [vmem:[%s184_s1 + $0x20] sm:$0xff]  ;;  %v16_v21 = vld [vmem:[%s184_s1 + $0x18] sm:$0xff] }
   0x8   :  { %44 = vmatpush.msra.mxu0 %v25_v5  ;;  %v18_v19 = vld [vmem:[%s184_s1 + $0x28] sm:$0xff]  ;;  %v15_v22 = vld [vmem:[%s184_s1 + $0x10] sm:$0xff]  ;;  %v13_v24 = vld [vmem:[%s184_s1] sm:$0xff] }
   0x9   :  { %72 = vmatpush.msra.mxu1 %v33_v8  ;;  %v14_v23 = vld [vmem:[%s184_s1 + $0x8] sm:$0xff]  ;;  %v11_v25 = vld [vmem:[%s185_s0] sm:$0xff] }
   0xa   :  { %45 = vmatpush.msra.mxu0 %v24_v7 }
   0xb   :  { %73 = vmatpush.msra.mxu1 %v32_v10 }
   0xc   :  { %46 = vmatpush.msra.mxu0 %v23_v9 }
   0xd   :  { %74 = vmatpush.msra.mxu1 %v31_v12 }
   0xe   :  { %47 = vmatpush.msra.mxu0 %v22_v11 }
   0xf   :  { %75 = vmatpush.msra.mxu1 %v30_v14 }
  0x10   :  { %48 = vmatpush.msra.mxu0 %v21_v13 }
  0x11   :  { %76 = vmatpush.msra.mxu1 %v29_v16 }
  0x12   :  { %49 = vmatpush.msra.mxu0 %v20_v15  ;;  %87 = vmatmul.msk.f32.vlgmr.msra.gmra.mxu1 %vm37_vm0, %v12_v18 }
  0x14   :  { %50 = vmatpush.msra.mxu0 %v19_v17 }
  0x16   :  { %51 = vmatpush.msra.mxu0 %v18_v19 }
  0x18   :  { %52 = vmatpush.msra.mxu0 %v17_v20 }
  0x1a   :  { %53 = vmatpush.msra.mxu0 %v16_v21 }
  0x1c   :  { %54 = vmatpush.msra.mxu0 %v15_v22 }
  0x1e   :  { %55 = vmatpush.msra.mxu0 %v14_v23 }
  0x20   :  { %56 = vmatpush.msra.mxu0 %v13_v24 }
  0x21   :  { %57 = vmatmul.f32.vlgmr.msra.gmra.mxu0 %v11_v25 }
  0x8f   :  { %v78_v26 = vpop.f32.mrf.mxu1 }
  0x9e   :  { %v58_v27 = vpop.f32.mrf.mxu0 }
  0x9f   :  { %v79_v28 = vadd.f32 %v78_v26, %v58_v27 }
  0xa1   :  { %82 = vst.msk [vmem:[%s186_s2] sm:$0xff] %vm81_vm1, %v79_v28 }

// kernel: clip_forward.6
= control target key start
LH: loop header
LB: loop body
LE: loop exit
PB: predicated region body
PF: predicated region fallthrough
CT: control target
= control target key end

     0   :  { %s1620_s21 = smov 0   ;;  %s1622_s22 = smov 0   ;;  %s1850_s0 = inlined_call_operand.vmem [shape: f32[2,5,32], index: 0, kind: input, shape index: {}]   ;;  %s1851_s1 = inlined_call_operand.vmem [shape: f32[5,32], index: 1, kind: input, shape index: {}]   ;;  %s1852_s2 = inlined_call_operand.vmem [shape: f32[1,32], index: 2, kind: input, shape index: {}]   ;;  %s1853_s3 = inlined_call_operand.vmem [shape: f32[1,32], index: 3, kind: input, shape index: {}]   ;;  %s1854_s4 = inlined_call_operand.vmem [shape: f32[2,1,32], index: 4, kind: input, shape index: {}]   ;;  %s1855_s5 = inlined_call_operand.vmem [shape: f32[2,1,32], index: 5, kind: input, shape index: {}]   ;;  %s1856_s6 = inlined_call_operand.vmem [shape: f32[2,32,96], index: 6, kind: input, shape index: {}]   ;;  %s1857_s7 = inlined_call_operand.vmem [shape: f32[2,1,96], index: 7, kind: input, shape index: {}]   ;;  %s1858_s8 = inlined_call_operand.vmem [shape: f32[2,32,32], index: 8, kind: input, shape index: {}]   ;;  %s1859_s9 = inlined_call_operand.vmem [shape: f32[2,1,32], index: 9, kind: input, shape index: {}]   ;;  %s1860_s10 = inlined_call_operand.vmem [shape: f32[2,1,32], index: 10, kind: input, shape index: {}]   ;;  %s1861_s11 = inlined_call_operand.vmem [shape: f32[2,1,32], index: 11, kind: input, shape index: {}]   ;;  %s1862_s12 = inlined_call_operand.vmem [shape: f32[2,32,128], index: 12, kind: input, shape index: {}]   ;;  %s1863_s13 = inlined_call_operand.vmem [shape: f32[2,1,128], index: 13, kind: input, shape index: {}]   ;;  %s1864_s14 = inlined_call_operand.vmem [shape: f32[2,128,32], index: 14, kind: input, shape index: {}]   ;;  %s1865_s15 = inlined_call_operand.vmem [shape: f32[2,1,32], index: 15, kind: input, shape index: {}]   ;;  %s1866_s16 = inlined_call_operand.vmem [shape: f32[2,5,32], index: 16, kind: output, shape index: {}]  }
   0x1   :  { %1871 = sst [smem:[#allocation9_spill]] %s1850_s0  ;;  %s1624_s23 = smov 0  }
   0x2   :  { %1872 = sst [smem:[#allocation10_spill]] %s1851_s1  ;;  %s1626_s24 = smov 0  }
   0x3   :  { %1873 = sst [smem:[#allocation11_spill]] %s1852_s2  ;;  %s1628_s25 = smov 0  }
   0x4   :  { %1874 = sst [smem:[#allocation12_spill]] %s1853_s3 }
   0x5   :  { %1875 = sst [smem:[#allocation13_spill]] %s1855_s5 }
   0x6   :  { %1876 = sst [smem:[#allocation14_spill]] %s1856_s6 }
   0x7   :  { %1877 = sst [smem:[#allocation15_spill]] %s1858_s8 }
   0x8   :  { %1878 = sst [smem:[#allocation16_spill]] %s1866_s16 }
   0x9 LB: > { %1879 = sst [smem:[#allocation3_spill]] %s1510_s21  ;;  %s35_s26 = sadd.s32 1, %s1518_s23  ;;  %s1526_s25 = sphi %s1628_s25, %s26_s25   ;;  %s1522_s24 = sphi %s1626_s24, %s1906_s24   ;;  %s1518_s23 = sphi %s1624_s23, %s1905_s23   ;;  %s1514_s22 = sphi %s1622_s22, %s1904_s22   ;;  %s1510_s21 = sphi %s1620_s21, %s1903_s21  }
   0xa   : > { %1880 = sst [smem:[#allocation4_spill]] %s1518_s23  ;;  %s38_s27 = sadd.s32 1, %s1522_s24 }
   0xb   : > { %1881 = sst [smem:[#allocation5_spill]] %s1522_s24  ;;  %p36_p0 = scmp.ge.s32.totalorder %s35_s26, 2 }
   0xc   : > { %1882 = sst [smem:[#allocation6_spill]] %s1526_s25  ;;  %p1379_p1 = scmp.ge.s32.totalorder %s1526_s25, 1 }
   0xd   : > { %p577_p2 = scmp.lt.s32.totalorder %s1526_s25, 5  ;;  %s1908_s26 = smov (%p36_p0, %s35_s26), 0 }
   0xe   : > { %1883 = sst [smem:[#allocation7_spill]] %s1908_s26  ;;  %s1910_s27 = smov (!%p36_p0, %s38_s27), %s1522_s24 }
   0xf   : > { %p578_p3 = pnand %p1379_p1, %p577_p2  ;;  %p40_p4 = scmp.ge.s32.totalorder %s1910_s27, 2 }
  0x10   : > { %p669_p5 = scmp.lt.s32.totalorder (!%p578_p3), %s1514_s22, 1  ;;  %p673_p6 = scmp.lt.s32.totalorder (!%p578_p3), %s1510_s21, 1 }
  0x11   : > { %s1912_s27 = smov (%p40_p4, %s1910_s27), 0  ;;  %581 = sbr.rel (%p578_p3) target bundleno = 2078 (0x81e), region = 84 }
  0x12   : > { %1884 = sst [smem:[#allocation8_spill]] %s1912_s27 }
  0x13   : > { %s1885_s17 = sld [smem:[#allocation9_spill]] (!%p578_p3) }
  0x14   : > { %s1887_s6 = sld [smem:[#allocation14_spill]] (!%p578_p3) }
  0x15   : > { %s1888_s8 = sld [smem:[#allocation15_spill]] (!%p578_p3) }
  0x16   : > { %s1914_s22 = smov (!%p669_p5, %s1514_s22), 1 }
  0x17   : > { %s1654_s28 = scalar_select %p673_p6, %s1510_s21, 1 }
  0x18   : > { %s1380_s29 = sshll.u32 %s1914_s22, 3 }
  0x19   : > { %s672_s18 = scalar_lea.vmem %s1885_s17, %s1380_s29  ;;  %s1407_s25 = sshll.u32 %s1654_s28, 5 }
  0x1a   : > { %s1671_s1 = scalar_lea.vmem %s1887_s6, %s1407_s25  ;;  %s1697_s22 = scalar_lea.vmem %s1862_s12, %s1407_s25 }
  0x1b   : > { %s1680_s17 = scalar_lea.vmem %s1888_s8, %s1407_s25  ;;  %s708_s16 = scalar_lea.vmem %s1863_s13, %s1654_s28 }
  0x1c   : > { %s1410_s8 = sshll.u32 %s1654_s28, 7  ;;  %s716_s24 = scalar_lea.vmem %s1865_s15, %s1654_s28 }
  0x1d   : > { %s1711_s27 = scalar_lea.vmem %s1864_s14, %s1410_s8  ;;  %s1889_s6 = sld [smem:[#allocation16_spill]] }
  0x1e   : > { %s1890_s25 = sld [smem:[#allocation3_spill]] }
  0x23   : > { %s1716_s5 = scalar_lea.vmem %s1889_s6, %s1380_s29 }
  0x24   : > { %p1390_p7 = scmp.ne.s32.totalorder %s1890_s25, 0 }
  0x25   : > { %s1891_s0 = sld [smem:[#allocation10_spill]] (!%p1390_p7) }
  0x26   : > { %724 = sbr.rel (%p1390_p7) target bundleno = 316 (0x13c), region = 88  ;;  %s1892_s29 = sld [smem:[#allocation11_spill]] (!%p1390_p7) }
  0x27   : > { %s1893_s20 = sld [smem:[#allocation12_spill]] (!%p1390_p7) }
  0x2b   : > { %v725_v0 = vld [vmem:[%s672_s18] sm:$0x1f]  ;;  %vm730_vm0 = vcmask 258048   ;;  %v1528_v4 = vmov 32.0  }
  0x2c   : > { %v726_v1 = vld [vmem:[%s1891_s0] sm:$0x1f]  ;;  %1460 = vrcp.f32 %v1528_v4 }
  0x2d   : > { %v727_v2 = vadd.f32 %v726_v1, %v725_v0  ;;  %v1458_v25 = vld [vmem:[%s1892_s29] ss:$0 sm:$0xff] }
  0x2e   : > { %v1459_v27 = vld [vmem:[%s1893_s20] ss:$0 sm:$0xff] }
  0x2f   : > { %v731_v3 = vsel %vm730_vm0, %v727_v2, 0.0 }
  0x30   : > { %732 = vadd.xlane.f32.xlu0 %v731_v3 }
  0x32   : > { %v1461_v5 = vpop.eup %1460 }
  0x33   : > { %v735_v6 = vmul.f32 32.0, %v1461_v5  ;;  %vm739_vm1 = vweird.f32 %v1461_v5 }
  0x35   : > { %v736_v7 = vsub.f32 1.0, %v735_v6 }
  0x37   : > { %v737_v8 = vmul.f32 %v1461_v5, %v736_v7 }
  0x39   : > { %v738_v9 = vadd.f32 %v1461_v5, %v737_v8 }
  0x3b   : > { %v740_v10 = vsel %vm739_vm1, %v1461_v5, %v738_v9 }
  0xa3   : > { %v733_v11 = vpop.xlane.xlu0 %732 }
  0xa4   : > { %v741_v12 = vmul.f32 %v740_v10, %v733_v11 }
  0xa6   : > { %v742_v13 = vsub.f32 %v727_v2, %v741_v12 }
  0xa8   : > { %v743_v14 = vmul.f32 %v742_v13, %v742_v13 }
  0xaa   : > { %v744_v15 = vsel %vm730_vm0, %v743_v14, 0.0 }
  0xab   : > { %745 = vadd.xlane.f32.xlu0 %v744_v15 }
 0x11e   : > { %v746_v16 = vpop.xlane.xlu0 %745 }
 0x11f   : > { %v747_v17 = vmul.f32 %v746_v16, %v740_v10 }
 0x121   : > { %v748_v18 = vadd.f32 1e-05, %v747_v17 }
 0x123   : > { %1462 = vrsqrt.f32 %v748_v18  ;;  %vm755_vm3 = vweird.f32 %v748_v18 }
 0x129   : > { %v1463_v19 = vpop.eup %1462 }
 0x12a   : > { %v750_v20 = vmul.f32 %v1463_v19, %v748_v18  ;;  %vm756_vm2 = vweird.f32 %v1463_v19 }
 0x12b   : > { %vm757_vm4 = vmor %vm755_vm3, %vm756_vm2 }
 0x12c   : > { %v751_v21 = vmul.f32 %v1463_v19, %v750_v20 }
 0x12e   : > { %v752_v22 = vmul.f32 0.5, %v751_v21 }
 0x130   : > { %v753_v23 = vsub.f32 1.5, %v752_v22 }
 0x132   : > { %v754_v24 = vmul.f32 %v1463_v19, %v753_v23 }
 0x134   : > { %v758_v26 = vsel %vm757_vm4, %v1463_v19, %v754_v24 }
 0x135   : > { %v759_v28 = vmul.f32 %v758_v26, %v742_v13 }
 0x137   : > { %v763_v29 = vmul.f32 %v1458_v25, %v759_v28 }
 0x139   : > { %v767_v30 = vadd.f32 %v1459_v27, %v763_v29 }
 0x13b   : > { %768 = vst.msk [vmem:[#allocation2] sm:$0x1f] %vm730_vm0, %v767_v30 }
 0x13c PF: > { %vm772_vm5 = vcmask 258048   ;;  %v1529_v33 = vmov 32.0   ;;  %v813_v45 = vld [vmem:[%s1671_s1 + $0x18] sm:$0xff]  ;;  %v812_v46 = vld [vmem:[%s1671_s1 + $0x10] sm:$0xff]  ;;  %v811_v47 = vld [vmem:[%s1671_s1 + $0x8] sm:$0xff]  ;;  %s1894_s26 = scalar_lea.vmem %s1854_s4, %s1654_s28  ;;  %s1895_s25 = sld [smem:[#allocation13_spill]] }
 0x13d   : > { %1472 = vrcp.f32 %v1529_v33  ;;  %834 = vmatpush.msra.mxu0 %v813_v45  ;;  %v810_v48 = vld [vmem:[%s1671_s1] sm:$0xff]  ;;  %vm818_vm10 = vcmask 261120   ;;  %s1897_s6 = scalar_lea.vmem %s1857_s7, %s1654_s28  ;;  %s1530_s8 = smov 96   ;;  %vm851_vm11 = vcmask 130048   ;;  %vm877_vm12 = vcmask 36864   ;;  %v843_v23 = vld [vmem:[%s1680_s17 + $0x8] sm:$0xff] }
 0x13e   : > { %v1464_v58 = vld [vmem:[%s1894_s26] ss:$0 sm:$0xff]  ;;  %s1531_s29 = smov 112   ;;  %s1532_s18 = smov 80   ;;  %vm895_vm13 = vcmask 1044480   ;;  %vm891_vm14 = vcmask 39936  }
 0x13f   : > { %835 = vmatpush.msra.mxu0 %v812_v46  ;;  %v1466_v0 = vld [vmem:[%s1897_s6] ss:$0 sm:$0xff]  ;;  %s1533_s19 = smov 48   ;;  %s1534_s20 = smov 64   ;;  %v844_v33 = vld [vmem:[%s1680_s17 + $0x10] sm:$0xff] }
 0x140   : > { %v842_v24 = vld [vmem:[%s1680_s17] sm:$0xff]  ;;  %s1898_s26 = scalar_lea.vmem %s1859_s9, %s1654_s28  ;;  %s1899_s2 = scalar_lea.vmem %s1860_s10, %s1654_s28 }
 0x141   : > { %836 = vmatpush.msra.mxu0 %v811_v47  ;;  %s1901_s6 = sld [smem:[#allocation3_spill]] }
 0x142   : > { %v1731_v31 = vld [vmem:[#allocation2] sm:$0x1f]  ;;  %s1896_s21 = scalar_lea.vmem %s1895_s25, %s1654_s28 }
 0x143   : > { %v773_v32 = vsel %vm772_vm5, %v1731_v31, 0.0  ;;  %v1473_v34 = vpop.eup %1472  ;;  %837 = vmatpush.msra.mxu0 %v810_v48  ;;  %v1465_v61 = vld [vmem:[%s1896_s21] ss:$0 sm:$0xff]  ;;  %s1900_s21 = scalar_lea.vmem %s1861_s11, %s1654_s28 }
 0x144   : > { %774 = vadd.xlane.f32.xlu0 %v773_v32  ;;  %v777_v35 = vmul.f32 32.0, %v1473_v34  ;;  %vm781_vm6 = vweird.f32 %v1473_v34  ;;  %v845_v32 = vld [vmem:[%s1680_s17 + $0x18] sm:$0xff] }
 0x146   : > { %v778_v36 = vsub.f32 1.0, %v777_v35 }
 0x147   : > { %p1404_p8 = scmp.ne.s32.totalorder %s1901_s6, 1 }
 0x148   : > { %v779_v37 = vmul.f32 %v1473_v34, %v778_v36 }
 0x14a   : > { %v780_v38 = vadd.f32 %v1473_v34, %v779_v37  ;;  %v1467_v37 = vld [vmem:[%s1898_s26] ss:$0 sm:$0xff] }
 0x14c   : > { %v1735_v39 = vsel %vm781_vm6, %v1473_v34, %v780_v38 }
 0x1b7   : > { %v775_v40 = vpop.xlane.xlu0 %774 }
 0x1b8   : > { %v783_v41 = vmul.f32 %v1735_v39, %v775_v40 }
 0x1ba   : > { %v784_v42 = vsub.f32 %v1731_v31, %v783_v41 }
 0x1bc   : > { %v785_v43 = vmul.f32 %v784_v42, %v784_v42 }
 0x1be   : > { %v786_v44 = vsel %vm772_vm5, %v785_v43, 0.0 }
 0x1bf   : > { %787 = vadd.xlane.f32.xlu0 %v786_v44 }
 0x232   : > { %v788_v49 = vpop.xlane.xlu0 %787 }
 0x233   : > { %v789_v50 = vmul.f32 %v788_v49, %v1735_v39  ;;  %v1071_v49 = vld [vmem:[%s1697_s22 + $0x18] sm:$0xff] }
 0x234   : > { %1091 = vmatpush.msrb.mxu0 %v1071_v49 }
 0x235   : > { %v790_v51 = vadd.f32 1e-05, %v789_v50  ;;  %v1070_v50 = vld [vmem:[%s1697_s22 + $0x10] sm:$0xff] }
 0x236   : > { %1092 = vmatpush.msrb.mxu0 %v1070_v50 }
 0x237   : > { %1474 = vrsqrt.f32 %v790_v51  ;;  %vm797_vm8 = vweird.f32 %v790_v51 }
 0x23d   : > { %v1475_v52 = vpop.eup %1474 }
 0x23e   : > { %v792_v53 = vmul.f32 %v1475_v52, %v790_v51  ;;  %vm798_vm7 = vweird.f32 %v1475_v52  ;;  %v1069_v51 = vld [vmem:[%s1697_s22 + $0x8] sm:$0xff] }
 0x23f   : > { %vm799_vm9 = vmor %vm797_vm8, %vm798_vm7  ;;  %1093 = vmatpush.msrb.mxu0 %v1069_v51 }
 0x240   : > { %v793_v54 = vmul.f32 %v1475_v52, %v792_v53 }
 0x242   : > { %v794_v55 = vmul.f32 0.5, %v793_v54 }
 0x244   : > { %v795_v56 = vsub.f32 1.5, %v794_v55 }
 0x246   : > { %v796_v57 = vmul.f32 %v1475_v52, %v795_v56 }
 0x248   : > { %v800_v59 = vsel %vm799_vm9, %v1475_v52, %v796_v57 }
 0x249   : > { %v801_v60 = vmul.f32 %v800_v59, %v784_v42 }
 0x24b   : > { %v805_v62 = vmul.f32 %v1464_v58, %v801_v60 }
 0x24d   : > { %v809_v63 = vadd.f32 %v1465_v61, %v805_v62 }
 0x24f   : > { %1391 = vmatmul.msk.f32.vlgmr.msra.gmra.mxu0 %vm818_vm10, %v809_v63  ;;  %v1469_v63 = vld [vmem:[%s1900_s21] ss:$0 sm:$0xff] }
 0x2cc   : > { %v839_v1 = vpop.f32.mrf.mxu0 }
 0x2cd   : > { %v840_v2 = vadd.f32 %v1466_v0, %v839_v1 }
 0x2cf   : > { %849 = vrot.lane.b32.xlu1 %v840_v2, %s1530_s8  ;;  %v847_v3 = vmul.f32 0.25, %v840_v2 }
 0x2d1   : > { %945 = vrot.lane.b32.xlu2 %v847_v3, %s1531_s29 }
 0x2d7   : > { %947 = vrot.lane.b32.xlu1 %v840_v2, %s1532_s18 }
 0x32b   : > { %v946_v6 = vpop.permute.xlu2 %945 }
 0x341   : > { %v850_v4 = vpop.permute.xlu1 %849 }
 0x342   : > { %1392 = vmatpush.xpose.msk.msra.mxu1 %vm851_vm11, %v850_v4  ;;  %v1156_v4 = vld [vmem:[%s1711_s27 + $0x68] sm:$0xff] }
 0x345   : > { %1393 = vmatmul.msk.f32.vlgmr.msra.gmra.mxu1 %vm851_vm11, %v847_v3  ;;  %v1157_v3 = vld [vmem:[%s1711_s27 + $0x70] sm:$0xff] }
 0x349   : > { %v948_v5 = vpop.permute.xlu1 %947 }
 0x34a   : > { %1397 = vmatpush.xpose.msk.msrb.mxu1 %vm851_vm11, %v948_v5  ;;  %v1155_v5 = vld [vmem:[%s1711_s27 + $0x60] sm:$0xff] }
 0x34d   : > { %1398 = vmatmul.msk.f32.vlgmr.msrb.gmra.mxu1 %vm851_vm11, %v946_v6  ;;  %v1470_v6 = vld [vmem:[%s708_s16] ss:$0 sm:$0xff] }
 0x3c2   : > { %v874_v7 = vpop.f32.mrf.mxu1 }
 0x3c3   : > { %v878_v8 = vsel %vm877_vm12, %v874_v7, -inf }
 0x3c4   : > { %879 = vmax.xlane.f32.xlu2 %v878_v8  ;;  %v1153_v8 = vld [vmem:[%s1711_s27 + $0x50] sm:$0xff] }
 0x3ca   : > { %v970_v9 = vpop.f32.mrf.mxu1 }
 0x3cb   : > { %v973_v10 = vsel %vm877_vm12, %v970_v9, -inf }
 0x3cc   : > { %974 = vmax.xlane.f32.xlu0 %v973_v10  ;;  %v1152_v10 = vld [vmem:[%s1711_s27 + $0x48] sm:$0xff] }
 0x3dc   : > { %984 = vrot.lane.b32.xlu2 %v840_v2, %s1533_s19 }
 0x3e0   : > { %889 = vrot.lane.b32.xlu0 %v840_v2, %s1534_s20  ;;  %v1158_v2 = vld [vmem:[%s1711_s27 + $0x78] sm:$0xff] }
 0x3e1   : > { %1159 = vmatpush.msra.mxu2 %v1158_v2 }
 0x3e3   : > { %1160 = vmatpush.msra.mxu2 %v1157_v3 }
 0x3e5   : > { %1161 = vmatpush.msra.mxu2 %v1156_v4 }
 0x3e7   : > { %1162 = vmatpush.msra.mxu2 %v1155_v5 }
 0x437   : > { %v880_v11 = vpop.xlane.xlu2 %879 }
 0x438   : > { %v881_v12 = vsub.f32 %v874_v7, %v880_v11  ;;  %v1154_v7 = vld [vmem:[%s1711_s27 + $0x58] sm:$0xff] }
 0x439   : > { %1163 = vmatpush.msra.mxu2 %v1154_v7 }
 0x43a   : > { %v882_v13 = vmul.f32 1.442695, %v881_v12  ;;  %v1151_v12 = vld [vmem:[%s1711_s27 + $0x40] sm:$0xff] }
 0x43b   : > { %1164 = vmatpush.msra.mxu2 %v1153_v8 }
 0x43c   : > { %1476 = vpow2.f32 %v882_v13 }
 0x43d   : > { %1165 = vmatpush.msra.mxu2 %v1152_v10 }
 0x43f   : > { %v975_v14 = vpop.xlane.xlu0 %974  ;;  %v985_v15 = vpop.permute.xlu2 %984  ;;  %1166 = vmatpush.msra.mxu2 %v1151_v12 }
 0x440   : > { %v976_v16 = vsub.f32 %v970_v9, %v975_v14  ;;  %1399 = vmatpush.msk.msra.mxu1 %vm895_vm13, %v985_v15  ;;  %v1150_v14 = vld [vmem:[%s1711_s27 + $0x38] sm:$0xff] }
 0x441   : > { %1167 = vmatpush.msra.mxu2 %v1150_v14 }
 0x442   : > { %v1477_v17 = vpop.eup %1476  ;;  %v977_v18 = vmul.f32 1.442695, %v976_v16  ;;  %v1149_v16 = vld [vmem:[%s1711_s27 + $0x30] sm:$0xff] }
 0x443   : > { %v884_v19 = vsel %vm877_vm12, %v1477_v17, 0.0  ;;  %1168 = vmatpush.msra.mxu2 %v1149_v16 }
 0x444   : > { %1478 = vpow2.f32 %v977_v18  ;;  %885 = vadd.xlane.f32.xlu1 %v884_v19  ;;  %v1148_v18 = vld [vmem:[%s1711_s27 + $0x28] sm:$0xff] }
 0x445   : > { %1169 = vmatpush.msra.mxu2 %v1148_v18 }
 0x44a   : > { %v1479_v20 = vpop.eup %1478 }
 0x44b   : > { %v979_v21 = vsel %vm877_vm12, %v1479_v20, 0.0 }
 0x44c   : > { %980 = vadd.xlane.f32.xlu0 %v979_v21  ;;  %v1147_v21 = vld [vmem:[%s1711_s27 + $0x20] sm:$0xff] }
 0x44d   : > { %1170 = vmatpush.msra.mxu2 %v1147_v21 }
 0x452   : > { %v890_v22 = vpop.permute.xlu0 %889 }
 0x453   : > { %1394 = vmatpush.msk.msra.mxu3 %vm895_vm13, %v890_v22 }
 0x455   : > { %935 = vmatpush.msrb.mxu3 %v843_v23 }
 0x457   : > { %936 = vmatpush.msrb.mxu3 %v842_v24  ;;  %v1146_v24 = vld [vmem:[%s1711_s27 + $0x18] sm:$0xff] }
 0x458   : > { %1171 = vmatpush.msra.mxu2 %v1146_v24 }
 0x4b7   : > { %v886_v25 = vpop.xlane.xlu1 %885 }
 0x4b8   : > { %1480 = vrcp.f32 %v886_v25 }
 0x4be   : > { %v1481_v26 = vpop.eup %1480 }
 0x4bf   : > { %v981_v27 = vpop.xlane.xlu0 %980  ;;  %v888_v28 = vmul.f32 %v1481_v26, %v1477_v17 }
 0x4c0   : > { %1482 = vrcp.f32 %v981_v27  ;;  %v1145_v27 = vld [vmem:[%s1711_s27 + $0x10] sm:$0xff] }
 0x4c1   : > { %1395 = vmatmul.msk.f32.vlgmr.msra.gmra.mxu3 %vm891_vm14, %v888_v28  ;;  %1172 = vmatpush.msra.mxu2 %v1145_v27 }
 0x4c2   : > { %1028 = vmatpush.msra.mxu3 %v845_v32 }
 0x4c4   : > { %1029 = vmatpush.msra.mxu3 %v844_v33  ;;  %v1143_v33 = vld [vmem:[%s1711_s27] sm:$0xff] }
 0x4c6   : > { %v1483_v29 = vpop.eup %1482 }
 0x4c7   : > { %v983_v30 = vmul.f32 %v1483_v29, %v1479_v20 }
 0x4c9   : > { %1400 = vmatmul.msk.f32.vlgmr.msra.gmra.mxu1 %vm891_vm14, %v983_v30  ;;  %v1144_v30 = vld [vmem:[%s1711_s27 + $0x8] sm:$0xff] }
 0x4ca   : > { %1173 = vmatpush.msra.mxu2 %v1144_v30 }
 0x4cc   : > { %1174 = vmatpush.msra.mxu2 %v1143_v33 }
 0x544   : > { %v915_v34 = vpop.f32.mrf.mxu3 }
 0x545   : > { %1396 = vmatmul.msk.f32.vlgmr.msrb.gmra.mxu3 %vm851_vm11, %v915_v34 }
 0x546   : > { %v1008_v35 = vpop.f32.mrf.mxu1 }
 0x54d   : > { %1401 = vmatmul.msk.f32.vlgmr.msra.gmra.mxu3 %vm851_vm11, %v1008_v35 }
 0x5c8   : > { %v938_v36 = vpop.f32.mrf.mxu3 }
 0x5c9   : > { %v944_v38 = vadd.f32 %v1467_v37, %v938_v36 }
 0x5d0   : > { %v1031_v40 = vpop.f32.mrf.mxu3 }
 0x5d1   : > { %v1034_v41 = vadd.f32 %v1031_v40, %v944_v38 }
 0x5d3   : > { %v1781_v42 = vadd.f32 %v1034_v41, %v1731_v31  ;;  %v1068_v31 = vld [vmem:[%s1697_s22] sm:$0xff] }
 0x5d4   : > { %1094 = vmatpush.msrb.mxu0 %v1068_v31 }
 0x5d5   : > { %v1038_v43 = vsel %vm772_vm5, %v1781_v42, 0.0 }
 0x5d6   : > { %1039 = vadd.xlane.f32.xlu1 %v1038_v43 }
 0x649   : > { %v1040_v44 = vpop.xlane.xlu1 %1039 }
 0x64a   : > { %v1041_v45 = vmul.f32 %v1040_v44, %v1735_v39 }
 0x64c   : > { %v1042_v46 = vsub.f32 %v1781_v42, %v1041_v45 }
 0x64e   : > { %v1043_v47 = vmul.f32 %v1042_v46, %v1042_v46 }
 0x650   : > { %v1044_v48 = vsel %vm772_vm5, %v1043_v47, 0.0 }
 0x651   : > { %1045 = vadd.xlane.f32.xlu1 %v1044_v48 }
 0x6c4   : > { %v1046_v52 = vpop.xlane.xlu1 %1045 }
 0x6c5   : > { %v1047_v53 = vmul.f32 %v1046_v52, %v1735_v39  ;;  %v1468_v39 = vld [vmem:[%s1899_s2] ss:$0 sm:$0xff] }
 0x6c7   : > { %v1048_v54 = vadd.f32 1e-05, %v1047_v53 }
 0x6c9   : > { %1484 = vrsqrt.f32 %v1048_v54  ;;  %vm1055_vm0 = vweird.f32 %v1048_v54 }
 0x6cf   : > { %v1485_v55 = vpop.eup %1484 }
 0x6d0   : > { %v1050_v56 = vmul.f32 %v1485_v55, %v1048_v54  ;;  %vm1056_vm15 = vweird.f32 %v1485_v55 }
 0x6d1   : > { %vm1057_vm1 = vmor %vm1055_vm0, %vm1056_vm15 }
 0x6d2   : > { %v1051_v57 = vmul.f32 %v1485_v55, %v1050_v56 }
 0x6d4   : > { %v1052_v58 = vmul.f32 0.5, %v1051_v57 }
 0x6d6   : > { %v1053_v59 = vsub.f32 1.5, %v1052_v58 }
 0x6d8   : > { %v1054_v60 = vmul.f32 %v1485_v55, %v1053_v59 }
 0x6da   : > { %v1058_v61 = vsel %vm1057_vm1, %v1485_v55, %v1054_v60 }
 0x6db   : > { %v1059_v62 = vmul.f32 %v1058_v61, %v1042_v46  ;;  %v1471_v61 = vld [vmem:[%s716_s24] ss:$0 sm:$0xff] }
 0x6dd   : > { %v1063_v0 = vmul.f32 %v1468_v39, %v1059_v62 }
 0x6df   : > { %v1067_v1 = vadd.f32 %v1469_v63, %v1063_v0 }
 0x6e1   : > { %1402 = vmatmul.msk.f32.vlgmr.msrb.gmra.mxu0 %vm818_vm10, %v1067_v1 }
 0x75e   : > { %v1096_v9 = vpop.f32.mrf.mxu0 }
 0x75f   : > { %v1097_v11 = vadd.f32 %v1470_v6, %v1096_v9 }
 0x761   : > { %v1100_v13 = vmul.f32 0.70710677, %v1097_v11  ;;  %v1099_v59 = vmul.f32 0.5, %v1097_v11 }
 0x763   : > { %v1101_v15 = vmul.f32 %v1100_v13, %v1100_v13 }
 0x765   : > { %v1102_v17 = vmin.f32 %v1101_v15, 16.0 }
 0x767   : > { %v1103_v19 = vmul.f32 2.1237322e-06, %v1102_v17  ;;  %v1114_v20 = vmul.f32 3.8918573e-05, %v1102_v17 }
 0x769   : > { %v1104_v22 = vadd.f32 0.00028619796, %v1103_v19  ;;  %v1115_v23 = vadd.f32 0.001143296, %v1114_v20 }
 0x76b   : > { %v1105_v25 = vmul.f32 %v1104_v22, %v1102_v17  ;;  %v1116_v26 = vmul.f32 %v1115_v23, %v1102_v17 }
 0x76d   : > { %v1117_v28 = vadd.f32 0.014752088, %v1116_v26  ;;  %v1106_v29 = vadd.f32 0.0036580483, %v1105_v25 }
 0x76f   : > { %v1118_v32 = vmul.f32 %v1117_v28, %v1102_v17  ;;  %v1107_v35 = vmul.f32 %v1106_v29, %v1102_v17 }
 0x771   : > { %v1119_v34 = vadd.f32 0.112945676, %v1118_v32  ;;  %v1108_v38 = vadd.f32 0.05243302, %v1107_v35 }
 0x773   : > { %v1120_v36 = vmul.f32 %v1119_v34, %v1102_v17  ;;  %v1109_v43 = vmul.f32 %v1108_v38, %v1102_v17 }
 0x775   : > { %v1121_v37 = vadd.f32 0.4994258, %v1120_v36  ;;  %v1110_v44 = vadd.f32 0.18741608, %v1109_v43 }
 0x777   : > { %v1122_v40 = vmul.f32 %v1121_v37, %v1102_v17  ;;  %v1111_v46 = vmul.f32 %v1110_v44, %v1102_v17 }
 0x779   : > { %v1123_v41 = vadd.f32 1.0, %v1122_v40  ;;  %v1112_v50 = vadd.f32 1.1283791, %v1111_v46 }
 0x77b   : > { %1486 = vrcp.f32 %v1123_v41  ;;  %v1135_v49 = vand.u32 2147483648, %v1123_v41  ;;  %v1133_v31 = vand.u32 2147483647, %v1123_v41  ;;  %vm1129_vm3 = vweird.f32 %v1123_v41 }
 0x77c   : > { %v1113_v54 = vmul.f32 %v1112_v50, %v1100_v13 }
 0x77d   : > { %v1136_v53 = vor.u32 1.1754944e-38, %v1135_v49  ;;  %vm1134_vm6 = vcmp.eq.f32.partialorder %v1133_v31, 8.507059e+37 }
 0x781   : > { %v1487_v45 = vpop.eup %1486 }
 0x782   : > { %v1125_v47 = vmul.f32 %v1487_v45, %v1123_v41  ;;  %vm1130_vm2 = vweird.f32 %v1487_v45 }
 0x783   : > { %vm1131_vm4 = vmor %vm1129_vm3, %vm1130_vm2 }
 0x784   : > { %v1126_v48 = vsub.f32 1.0, %v1125_v47 }
 0x786   : > { %v1127_v51 = vmul.f32 %v1487_v45, %v1126_v48 }
 0x788   : > { %v1128_v52 = vadd.f32 %v1487_v45, %v1127_v51 }
 0x78a   : > { %v1132_v55 = vsel %vm1131_vm4, %v1487_v45, %v1128_v52 }
 0x78b   : > { %v1137_v56 = vsel %vm1134_vm6, %v1136_v53, %v1132_v55 }
 0x78c   : > { %v1138_v57 = vmul.f32 %v1137_v56, %v1113_v54 }
 0x78e   : > { %v1403_v58 = vclamps-f32 %v1138_v57, 1.0 }
 0x790   : > { %v1141_v60 = vadd.f32 1.0, %v1403_v58 }
 0x792   : > { %v1142_v39 = vmul.f32 %v1141_v60, %v1099_v59 }
 0x794   : > { %1175 = vmatmul.f32.vlgmr.msra.gmra.mxu2 %v1142_v39 }
 0x817   : > { %v1176_v62 = vpop.f32.mrf.mxu2 }
 0x818   : > { %v1179_v63 = vadd.f32 %v1176_v62, %v1781_v42  ;;  %1189 = sbr.rel (%p1404_p8) target bundleno = 2078 (0x81e), region = 92 }
 0x81a   : > { %v1184_v0 = vadd.f32 %v1471_v61, %v1179_v63 }
 0x81c   : > { %1185 = vst.msk [vmem:[#allocation2] sm:$0x1f] %vm772_vm5, %v1184_v0 }
 0x81d   : > { %1190 = vst.msk [vmem:[%s1716_s5] sm:$0x1f] %vm772_vm5, %v1184_v0 }
 0x81e PF: > { %s1902_s8 = sld [smem:[#allocation6_spill]] }
 0x81f   : > { %s1903_s21 = sld [smem:[#allocation4_spill]] }
 0x820   : > { %s1904_s22 = sld [smem:[#allocation5_spill]] }
 0x821   : > { %s1905_s23 = sld [smem:[#allocation7_spill]] }
 0x822   : > { %s1906_s24 = sld [smem:[#allocation8_spill]] }
 0x824   : > { %s26_s25 = sadd.s32 1, %s1902_s8  }
 0x825   : > { %p23_p9 = scmp.ge.s32.totalorder %s26_s25, 6  }
 0x827   :  { %25 = sbr.rel (!%p23_p9) target bundleno = 9 (0x9), region = 158 }

// kernel: clip_forward.8
= control target key start
LH: loop header
LB: loop body
LE: loop exit
PB: predicated region body
PF: predicated region fallthrough
CT: control target
= control target key end

     0   :  { %s1509_s29 = smov 0   ;;  %s1511_s30 = smov 0   ;;  %s1732_s0 = inlined_call_operand.vmem [shape: f32[2,8,32], index: 0, kind: input, shape index: {}]   ;;  %s1733_s1 = inlined_call_operand.vmem [shape: f32[8,32], index: 1, kind: input, shape index: {}]   ;;  %s1734_s2 = inlined_call_operand.vmem [shape: f32[2,1,32], index: 2, kind: input, shape index: {}]   ;;  %s1735_s3 = inlined_call_operand.vmem [shape: f32[2,1,32], index: 3, kind: input, shape index: {}]   ;;  %s1736_s4 = inlined_call_operand.vmem [shape: f32[2,32,96], index: 4, kind: input, shape index: {}]   ;;  %s1737_s5 = inlined_call_operand.vmem [shape: f32[2,1,96], index: 5, kind: input, shape index: {}]   ;;  %s1738_s6 = inlined_call_operand.vmem [shape: f32[2,32,32], index: 6, kind: input, shape index: {}]   ;;  %s1739_s7 = inlined_call_operand.vmem [shape: f32[2,1,32], index: 7, kind: input, shape index: {}]   ;;  %s1740_s8 = inlined_call_operand.vmem [shape: f32[2,1,32], index: 8, kind: input, shape index: {}]   ;;  %s1741_s9 = inlined_call_operand.vmem [shape: f32[2,1,32], index: 9, kind: input, shape index: {}]   ;;  %s1742_s10 = inlined_call_operand.vmem [shape: f32[2,32,128], index: 10, kind: input, shape index: {}]   ;;  %s1743_s11 = inlined_call_operand.vmem [shape: f32[2,1,128], index: 11, kind: input, shape index: {}]   ;;  %s1744_s12 = inlined_call_operand.vmem [shape: f32[2,128,32], index: 12, kind: input, shape index: {}]   ;;  %s1745_s13 = inlined_call_operand.vmem [shape: f32[2,1,32], index: 13, kind: input, shape index: {}]   ;;  %s1746_s14 = inlined_call_operand.vmem [shape: f32[2,8,32], index: 14, kind: output, shape index: {}]  }
   0x1   :  { %1751 = sst [smem:[#allocation9_spill]] %s1732_s0  ;;  %s1513_s15 = smov 0  }
   0x2   :  { %1752 = sst [smem:[#allocation10_spill]] %s1733_s1  ;;  %s1515_s16 = smov 0  }
   0x3   :  { %1753 = sst [smem:[#allocation11_spill]] %s1735_s3  ;;  %s1517_s17 = smov 0  }
   0x4   :  { %1754 = sst [smem:[#allocation12_spill]] %s1736_s4 }
   0x5   :  { %1755 = sst [smem:[#allocation13_spill]] %s1738_s6 }
   0x6   :  { %1756 = sst [smem:[#allocation14_spill]] %s1746_s14 }
   0x7 LB: > { %1757 = sst [smem:[#allocation3_spill]] %s1410_s29  ;;  %s33_s18 = sadd.s32 1, %s1418_s15  ;;  %s1426_s17 = sphi %s1517_s17, %s24_s17   ;;  %s1422_s16 = sphi %s1515_s16, %s1782_s16   ;;  %s1418_s15 = sphi %s1513_s15, %s1781_s15   ;;  %s1414_s30 = sphi %s1511_s30, %s1780_s30   ;;  %s1410_s29 = sphi %s1509_s29, %s1779_s29  }
   0x8   : > { %1758 = sst [smem:[#allocation4_spill]] %s1418_s15  ;;  %s36_s19 = sadd.s32 1, %s1422_s16 }
   0x9   : > { %1759 = sst [smem:[#allocation5_spill]] %s1422_s16  ;;  %p34_p0 = scmp.ge.s32.totalorder %s33_s18, 2 }
   0xa   : > { %1760 = sst [smem:[#allocation6_spill]] %s1426_s17  ;;  %p1288_p1 = scmp.ge.s32.totalorder %s1426_s17, 1 }
   0xb   : > { %p527_p2 = scmp.lt.s32.totalorder %s1426_s17, 5  ;;  %s1784_s18 = smov (%p34_p0, %s33_s18), 0 }
   0xc   : > { %1761 = sst [smem:[#allocation7_spill]] %s1784_s18  ;;  %s1786_s19 = smov (!%p34_p0, %s36_s19), %s1422_s16 }
   0xd   : > { %p528_p3 = pnand %p1288_p1, %p527_p2  ;;  %p38_p4 = scmp.ge.s32.totalorder %s1786_s19, 2 }
   0xe   : > { %p615_p5 = scmp.lt.s32.totalorder (!%p528_p3), %s1414_s30, 1  ;;  %p619_p6 = scmp.lt.s32.totalorder (!%p528_p3), %s1410_s29, 1 }
   0xf   : > { %s1788_s19 = smov (%p38_p4, %s1786_s19), 0  ;;  %531 = sbr.rel (%p528_p3) target bundleno = 1809 (0x711), region = 76 }
  0x10   : > { %1762 = sst [smem:[#allocation8_spill]] %s1788_s19 }
  0x11   : > { %s1763_s0 = sld [smem:[#allocation9_spill]] (!%p528_p3) }
  0x12   : > { %s1765_s4 = sld [smem:[#allocation12_spill]] (!%p528_p3) }
  0x13   : > { %s1766_s6 = sld [smem:[#allocation13_spill]] (!%p528_p3) }
  0x14   : > { %s1790_s30 = smov (!%p615_p5, %s1414_s30), 1 }
  0x15   : > { %s1543_s20 = scalar_select %p619_p6, %s1410_s29, 1 }
  0x16   : > { %s1289_s21 = sshll.u32 %s1790_s30, 3 }
  0x17   : > { %s618_s24 = scalar_lea.vmem %s1763_s0, %s1289_s21  ;;  %s1314_s16 = sshll.u32 %s1543_s20, 5 }
  0x18   : > { %s1560_s1 = scalar_lea.vmem %s1765_s4, %s1314_s16  ;;  %s1586_s30 = scalar_lea.vmem %s1742_s10, %s1314_s16 }
  0x19   : > { %s1569_s0 = scalar_lea.vmem %s1766_s6, %s1314_s16  ;;  %s654_s14 = scalar_lea.vmem %s1743_s11, %s1543_s20 }
  0x1a   : > { %s1317_s6 = sshll.u32 %s1543_s20, 7  ;;  %s662_s19 = scalar_lea.vmem %s1745_s13, %s1543_s20 }
  0x1b   : > { %s1600_s27 = scalar_lea.vmem %s1744_s12, %s1317_s6  ;;  %s1767_s4 = sld [smem:[#allocation14_spill]] }
  0x1c   : > { %s1768_s16 = sld [smem:[#allocation3_spill]] }
  0x21   : > { %s1605_s3 = scalar_lea.vmem %s1767_s4, %s1289_s21 }
  0x22   : > { %p1299_p7 = scmp.ne.s32.totalorder %s1768_s16, 0 }
  0x23   : > { %s1769_s23 = sld [smem:[#allocation10_spill]] (!%p1299_p7) }
  0x24   : > { %670 = sbr.rel (%p1299_p7) target bundleno = 46 (0x2e), region = 80 }
  0x29   : > { %v671_v0 = vld [vmem:[%s618_s24] sm:$0xff]  ;;  %vm674_vm0 = vcmask 261120  }
  0x2a   : > { %v672_v1 = vld [vmem:[%s1769_s23] sm:$0xff] }
  0x2b   : > { %v673_v2 = vadd.f32 %v672_v1, %v671_v0 }
  0x2d   : > { %675 = vst.msk [vmem:[#allocation2] sm:$0xff] %vm674_vm0, %v673_v2 }
  0x2e PF: > { %vm679_vm1 = vcmask 261120   ;;  %v1428_v5 = vmov 32.0   ;;  %v720_v17 = vld [vmem:[%s1560_s1 + $0x18] sm:$0xff]  ;;  %v719_v18 = vld [vmem:[%s1560_s1 + $0x10] sm:$0xff]  ;;  %v718_v19 = vld [vmem:[%s1560_s1 + $0x8] sm:$0xff]  ;;  %s1770_s6 = scalar_lea.vmem %s1734_s2, %s1543_s20  ;;  %s1771_s25 = sld [smem:[#allocation11_spill]]  ;;  %v748_v43 = vlaneseq }
  0x2f   : > { %1372 = vrcp.f32 %v1428_v5  ;;  %740 = vmatpush.msra.mxu0 %v720_v17  ;;  %v717_v20 = vld [vmem:[%s1560_s1] sm:$0xff]  ;;  %s1773_s15 = scalar_lea.vmem %s1737_s5, %s1543_s20  ;;  %s1429_s17 = smov 96   ;;  %vm762_vm6 = vcmask 130048   ;;  %vm789_vm8 = vcmask 64512   ;;  %v754_v0 = vld [vmem:[%s1569_s0 + $0x8] sm:$0xff] }
  0x30   : > { %v1364_v30 = vld [vmem:[%s1770_s6] ss:$0 sm:$0xff]  ;;  %s1430_s16 = smov 112   ;;  %s1431_s29 = smov 80   ;;  %v749_v44 = vshrl.u32 %v748_v43, 7  ;;  %v751_v45 = vand.u32 127, %v748_v43 }
  0x31   : > { %741 = vmatpush.msra.mxu0 %v719_v18  ;;  %v1366_v36 = vld [vmem:[%s1773_s15] ss:$0 sm:$0xff]  ;;  %s1432_s22 = smov 48   ;;  %s1433_s23 = smov 64   ;;  %v1067_v43 = vld [vmem:[%s1600_s27 + $0x78] sm:$0xff] }
  0x32   : > { %vm752_vm7 = vcmp.le.s32.totalorder %v751_v45, %v749_v44  ;;  %v753_v1 = vld [vmem:[%s1569_s0] sm:$0xff]  ;;  %s1774_s6 = scalar_lea.vmem %s1739_s7, %s1543_s20  ;;  %s1775_s21 = scalar_lea.vmem %s1740_s8, %s1543_s20  ;;  %1068 = vmatpush.msra.mxu2 %v1067_v43  ;;  %v1066_v44 = vld [vmem:[%s1600_s27 + $0x70] sm:$0xff]  ;;  %v1065_v45 = vld [vmem:[%s1600_s27 + $0x68] sm:$0xff] }
  0x33   : > { %742 = vmatpush.msra.mxu0 %v718_v19  ;;  %s1777_s15 = sld [smem:[#allocation3_spill]] }
  0x34   : > { %v1611_v3 = vld [vmem:[#allocation2] sm:$0xff]  ;;  %s1772_s26 = scalar_lea.vmem %s1771_s25, %s1543_s20  ;;  %1069 = vmatpush.msra.mxu2 %v1066_v44 }
  0x35   : > { %v680_v4 = vsel %vm679_vm1, %v1611_v3, 0.0  ;;  %v1373_v6 = vpop.eup %1372  ;;  %743 = vmatpush.msra.mxu0 %v717_v20  ;;  %v1365_v33 = vld [vmem:[%s1772_s26] ss:$0 sm:$0xff]  ;;  %s1776_s26 = scalar_lea.vmem %s1741_s9, %s1543_s20 }
  0x36   : > { %681 = vadd.xlane.f32.xlu0 %v680_v4  ;;  %v684_v7 = vmul.f32 32.0, %v1373_v6  ;;  %vm688_vm2 = vweird.f32 %v1373_v6  ;;  %1070 = vmatpush.msra.mxu2 %v1065_v45 }
  0x38   : > { %v685_v8 = vsub.f32 1.0, %v684_v7 }
  0x39   : > { %p1311_p8 = scmp.ne.s32.totalorder %s1777_s15, 1 }
  0x3a   : > { %v686_v9 = vmul.f32 %v1373_v6, %v685_v8 }
  0x3c   : > { %v687_v10 = vadd.f32 %v1373_v6, %v686_v9  ;;  %v756_v9 = vld [vmem:[%s1569_s0 + $0x18] sm:$0xff] }
  0x3e   : > { %v1615_v11 = vsel %vm688_vm2, %v1373_v6, %v687_v10  ;;  %v755_v10 = vld [vmem:[%s1569_s0 + $0x10] sm:$0xff] }
  0xa9   : > { %v682_v12 = vpop.xlane.xlu0 %681 }
  0xaa   : > { %v690_v13 = vmul.f32 %v1615_v11, %v682_v12 }
  0xac   : > { %v691_v14 = vsub.f32 %v1611_v3, %v690_v13 }
  0xae   : > { %v692_v15 = vmul.f32 %v691_v14, %v691_v14 }
  0xb0   : > { %v693_v16 = vsel %vm679_vm1, %v692_v15, 0.0  ;;  %v1367_v15 = vld [vmem:[%s1774_s6] ss:$0 sm:$0xff] }
  0xb1   : > { %694 = vadd.xlane.f32.xlu0 %v693_v16 }
 0x124   : > { %v695_v21 = vpop.xlane.xlu0 %694 }
 0x125   : > { %v696_v22 = vmul.f32 %v695_v21, %v1615_v11 }
 0x127   : > { %v697_v23 = vadd.f32 1e-05, %v696_v22 }
 0x129   : > { %1374 = vrsqrt.f32 %v697_v23  ;;  %vm704_vm4 = vweird.f32 %v697_v23 }
 0x12f   : > { %v1375_v24 = vpop.eup %1374 }
 0x130   : > { %v699_v25 = vmul.f32 %v1375_v24, %v697_v23  ;;  %vm705_vm3 = vweird.f32 %v1375_v24 }
 0x131   : > { %vm706_vm5 = vmor %vm704_vm4, %vm705_vm3 }
 0x132   : > { %v700_v26 = vmul.f32 %v1375_v24, %v699_v25 }
 0x134   : > { %v701_v27 = vmul.f32 0.5, %v700_v26  ;;  %v980_v26 = vld [vmem:[%s1586_s30 + $0x18] sm:$0xff] }
 0x135   : > { %1000 = vmatpush.msrb.mxu0 %v980_v26 }
 0x136   : > { %v702_v28 = vsub.f32 1.5, %v701_v27  ;;  %v979_v27 = vld [vmem:[%s1586_s30 + $0x10] sm:$0xff] }
 0x137   : > { %1001 = vmatpush.msrb.mxu0 %v979_v27 }
 0x138   : > { %v703_v29 = vmul.f32 %v1375_v24, %v702_v28  ;;  %v978_v28 = vld [vmem:[%s1586_s30 + $0x8] sm:$0xff] }
 0x139   : > { %1002 = vmatpush.msrb.mxu0 %v978_v28 }
 0x13a   : > { %v707_v31 = vsel %vm706_vm5, %v1375_v24, %v703_v29 }
 0x13b   : > { %v708_v32 = vmul.f32 %v707_v31, %v691_v14 }
 0x13d   : > { %v712_v34 = vmul.f32 %v1364_v30, %v708_v32 }
 0x13f   : > { %v716_v35 = vadd.f32 %v1365_v33, %v712_v34 }
 0x141   : > { %1300 = vmatmul.msk.f32.vlgmr.msra.gmra.mxu0 %vm679_vm1, %v716_v35 }
 0x1be   : > { %v745_v37 = vpop.f32.mrf.mxu0 }
 0x1bf   : > { %v746_v38 = vadd.f32 %v1366_v36, %v745_v37 }
 0x1c1   : > { %760 = vrot.lane.b32.xlu1 %v746_v38, %s1429_s17  ;;  %v758_v39 = vmul.f32 0.25, %v746_v38 }
 0x1c3   : > { %854 = vrot.lane.b32.xlu2 %v758_v39, %s1430_s16 }
 0x1c9   : > { %856 = vrot.lane.b32.xlu1 %v746_v38, %s1431_s29 }
 0x21d   : > { %v855_v42 = vpop.permute.xlu2 %854 }
 0x233   : > { %v761_v40 = vpop.permute.xlu1 %760 }
 0x234   : > { %1301 = vmatpush.xpose.msk.msra.mxu1 %vm762_vm6, %v761_v40  ;;  %v1369_v40 = vld [vmem:[%s1776_s26] ss:$0 sm:$0xff] }
 0x237   : > { %1302 = vmatmul.msk.f32.vlgmr.msra.gmra.mxu1 %vm762_vm6, %v758_v39 }
 0x23b   : > { %v857_v41 = vpop.permute.xlu1 %856 }
 0x23c   : > { %1305 = vmatpush.xpose.msk.msrb.mxu1 %vm762_vm6, %v857_v41 }
 0x23f   : > { %1306 = vmatmul.msk.f32.vlgmr.msrb.gmra.mxu1 %vm762_vm6, %v855_v42 }
 0x2b4   : > { %v785_v46 = vpop.f32.mrf.mxu1 }
 0x2b5   : > { %v788_v47 = vsel %vm752_vm7, %v785_v46, -inf  ;;  %v1064_v46 = vld [vmem:[%s1600_s27 + $0x60] sm:$0xff] }
 0x2b6   : > { %v790_v48 = vsel %vm789_vm8, %v788_v47, -inf  ;;  %1071 = vmatpush.msra.mxu2 %v1064_v46 }
 0x2b7   : > { %791 = vmax.xlane.f32.xlu2 %v790_v48  ;;  %v1063_v48 = vld [vmem:[%s1600_s27 + $0x58] sm:$0xff] }
 0x2b8   : > { %1072 = vmatpush.msra.mxu2 %v1063_v48 }
 0x2bc   : > { %v879_v49 = vpop.f32.mrf.mxu1 }
 0x2bd   : > { %v882_v50 = vsel %vm752_vm7, %v879_v49, -inf  ;;  %v1062_v49 = vld [vmem:[%s1600_s27 + $0x50] sm:$0xff] }
 0x2be   : > { %v883_v51 = vsel %vm789_vm8, %v882_v50, -inf  ;;  %1073 = vmatpush.msra.mxu2 %v1062_v49 }
 0x2bf   : > { %884 = vmax.xlane.f32.xlu0 %v883_v51  ;;  %v1061_v51 = vld [vmem:[%s1600_s27 + $0x48] sm:$0xff] }
 0x2c0   : > { %1074 = vmatpush.msra.mxu2 %v1061_v51 }
 0x2cf   : > { %894 = vrot.lane.b32.xlu2 %v746_v38, %s1432_s22 }
 0x2d3   : > { %801 = vrot.lane.b32.xlu0 %v746_v38, %s1433_s23 }
 0x32a   : > { %v792_v52 = vpop.xlane.xlu2 %791 }
 0x32b   : > { %v793_v53 = vsub.f32 %v788_v47, %v792_v52  ;;  %v1370_v47 = vld [vmem:[%s654_s14] ss:$0 sm:$0xff] }
 0x32d   : > { %v794_v54 = vmul.f32 1.442695, %v793_v53  ;;  %v1060_v53 = vld [vmem:[%s1600_s27 + $0x40] sm:$0xff] }
 0x32e   : > { %1075 = vmatpush.msra.mxu2 %v1060_v53 }
 0x32f   : > { %1376 = vpow2.f32 %v794_v54 }
 0x332   : > { %v885_v55 = vpop.xlane.xlu0 %884  ;;  %v895_v56 = vpop.permute.xlu2 %894 }
 0x333   : > { %v886_v57 = vsub.f32 %v882_v50, %v885_v55  ;;  %915 = vmatpush.msra.mxu1 %v895_v56  ;;  %v1059_v55 = vld [vmem:[%s1600_s27 + $0x38] sm:$0xff] }
 0x334   : > { %1076 = vmatpush.msra.mxu2 %v1059_v55 }
 0x335   : > { %v1377_v58 = vpop.eup %1376  ;;  %v887_v59 = vmul.f32 1.442695, %v886_v57  ;;  %v1058_v57 = vld [vmem:[%s1600_s27 + $0x30] sm:$0xff] }
 0x336   : > { %v796_v60 = vsel %vm789_vm8, %v1377_v58, 0.0  ;;  %1077 = vmatpush.msra.mxu2 %v1058_v57 }
 0x337   : > { %1378 = vpow2.f32 %v887_v59  ;;  %797 = vadd.xlane.f32.xlu1 %v796_v60  ;;  %v1057_v59 = vld [vmem:[%s1600_s27 + $0x28] sm:$0xff] }
 0x338   : > { %1078 = vmatpush.msra.mxu2 %v1057_v59 }
 0x33d   : > { %v1379_v61 = vpop.eup %1378 }
 0x33e   : > { %v889_v62 = vsel %vm789_vm8, %v1379_v61, 0.0 }
 0x33f   : > { %890 = vadd.xlane.f32.xlu0 %v889_v62  ;;  %v1056_v62 = vld [vmem:[%s1600_s27 + $0x20] sm:$0xff] }
 0x340   : > { %1079 = vmatpush.msra.mxu2 %v1056_v62 }
 0x345   : > { %v802_v63 = vpop.permute.xlu0 %801 }
 0x346   : > { %822 = vmatpush.msra.mxu3 %v802_v63 }
 0x348   : > { %844 = vmatpush.msrb.mxu3 %v754_v0 }
 0x34a   : > { %845 = vmatpush.msrb.mxu3 %v753_v1  ;;  %v1055_v1 = vld [vmem:[%s1600_s27 + $0x18] sm:$0xff] }
 0x34b   : > { %1080 = vmatpush.msra.mxu2 %v1055_v1 }
 0x3aa   : > { %v798_v2 = vpop.xlane.xlu1 %797 }
 0x3ab   : > { %1380 = vrcp.f32 %v798_v2 }
 0x3b1   : > { %v1381_v4 = vpop.eup %1380 }
 0x3b2   : > { %v891_v5 = vpop.xlane.xlu0 %890  ;;  %v800_v6 = vmul.f32 %v1381_v4, %v1377_v58 }
 0x3b3   : > { %1382 = vrcp.f32 %v891_v5  ;;  %v1054_v5 = vld [vmem:[%s1600_s27 + $0x10] sm:$0xff] }
 0x3b4   : > { %1303 = vmatmul.msk.f32.vlgmr.msra.gmra.mxu3 %vm789_vm8, %v800_v6  ;;  %1081 = vmatpush.msra.mxu2 %v1054_v5 }
 0x3b5   : > { %937 = vmatpush.msra.mxu3 %v756_v9 }
 0x3b7   : > { %938 = vmatpush.msra.mxu3 %v755_v10  ;;  %v1052_v10 = vld [vmem:[%s1600_s27] sm:$0xff] }
 0x3b9   : > { %v1383_v7 = vpop.eup %1382 }
 0x3ba   : > { %v893_v8 = vmul.f32 %v1383_v7, %v1379_v61 }
 0x3bc   : > { %1307 = vmatmul.msk.f32.vlgmr.msra.gmra.mxu1 %vm789_vm8, %v893_v8  ;;  %v1053_v8 = vld [vmem:[%s1600_s27 + $0x8] sm:$0xff] }
 0x3bd   : > { %1082 = vmatpush.msra.mxu2 %v1053_v8 }
 0x3bf   : > { %1083 = vmatpush.msra.mxu2 %v1052_v10 }
 0x437   : > { %v824_v12 = vpop.f32.mrf.mxu3 }
 0x438   : > { %1304 = vmatmul.msk.f32.vlgmr.msrb.gmra.mxu3 %vm762_vm6, %v824_v12 }
 0x439   : > { %v917_v13 = vpop.f32.mrf.mxu1 }
 0x440   : > { %1308 = vmatmul.msk.f32.vlgmr.msra.gmra.mxu3 %vm762_vm6, %v917_v13 }
 0x4bb   : > { %v847_v14 = vpop.f32.mrf.mxu3 }
 0x4bc   : > { %v853_v16 = vadd.f32 %v1367_v15, %v847_v14 }
 0x4c3   : > { %v940_v17 = vpop.f32.mrf.mxu3 }
 0x4c4   : > { %v943_v18 = vadd.f32 %v940_v17, %v853_v16 }
 0x4c6   : > { %v1663_v19 = vadd.f32 %v943_v18, %v1611_v3  ;;  %v977_v3 = vld [vmem:[%s1586_s30] sm:$0xff] }
 0x4c7   : > { %1003 = vmatpush.msrb.mxu0 %v977_v3 }
 0x4c8   : > { %v947_v20 = vsel %vm679_vm1, %v1663_v19, 0.0 }
 0x4c9   : > { %948 = vadd.xlane.f32.xlu1 %v947_v20 }
 0x53c   : > { %v949_v21 = vpop.xlane.xlu1 %948 }
 0x53d   : > { %v950_v22 = vmul.f32 %v949_v21, %v1615_v11 }
 0x53f   : > { %v951_v23 = vsub.f32 %v1663_v19, %v950_v22 }
 0x541   : > { %v952_v24 = vmul.f32 %v951_v23, %v951_v23 }
 0x543   : > { %v953_v25 = vsel %vm679_vm1, %v952_v24, 0.0 }
 0x544   : > { %954 = vadd.xlane.f32.xlu1 %v953_v25 }
 0x5b7   : > { %v955_v29 = vpop.xlane.xlu1 %954 }
 0x5b8   : > { %v956_v30 = vmul.f32 %v955_v29, %v1615_v11  ;;  %v1368_v11 = vld [vmem:[%s1775_s21] ss:$0 sm:$0xff] }
 0x5ba   : > { %v957_v31 = vadd.f32 1e-05, %v956_v30 }
 0x5bc   : > { %1384 = vrsqrt.f32 %v957_v31  ;;  %vm964_vm10 = vweird.f32 %v957_v31 }
 0x5c2   : > { %v1385_v32 = vpop.eup %1384 }
 0x5c3   : > { %v959_v33 = vmul.f32 %v1385_v32, %v957_v31  ;;  %vm965_vm9 = vweird.f32 %v1385_v32 }
 0x5c4   : > { %vm966_vm11 = vmor %vm964_vm10, %vm965_vm9 }
 0x5c5   : > { %v960_v34 = vmul.f32 %v1385_v32, %v959_v33 }
 0x5c7   : > { %v961_v35 = vmul.f32 0.5, %v960_v34 }
 0x5c9   : > { %v962_v36 = vsub.f32 1.5, %v961_v35 }
 0x5cb   : > { %v963_v37 = vmul.f32 %v1385_v32, %v962_v36 }
 0x5cd   : > { %v967_v38 = vsel %vm966_vm11, %v1385_v32, %v963_v37 }
 0x5ce   : > { %v968_v39 = vmul.f32 %v967_v38, %v951_v23  ;;  %v1371_v38 = vld [vmem:[%s662_s19] ss:$0 sm:$0xff] }
 0x5d0   : > { %v972_v41 = vmul.f32 %v1368_v11, %v968_v39 }
 0x5d2   : > { %v976_v42 = vadd.f32 %v1369_v40, %v972_v41 }
 0x5d4   : > { %1309 = vmatmul.msk.f32.vlgmr.msrb.gmra.mxu0 %vm679_vm1, %v976_v42 }
 0x651   : > { %v1005_v50 = vpop.f32.mrf.mxu0 }
 0x652   : > { %v1006_v52 = vadd.f32 %v1370_v47, %v1005_v50 }
 0x654   : > { %v1009_v54 = vmul.f32 0.70710677, %v1006_v52  ;;  %v1008_v36 = vmul.f32 0.5, %v1006_v52 }
 0x656   : > { %v1010_v56 = vmul.f32 %v1009_v54, %v1009_v54 }
 0x658   : > { %v1011_v58 = vmin.f32 %v1010_v56, 16.0 }
 0x65a   : > { %v1012_v60 = vmul.f32 2.1237322e-06, %v1011_v58  ;;  %v1023_v61 = vmul.f32 3.8918573e-05, %v1011_v58 }
 0x65c   : > { %v1013_v63 = vadd.f32 0.00028619796, %v1012_v60  ;;  %v1024_v0 = vadd.f32 0.001143296, %v1023_v61 }
 0x65e   : > { %v1014_v2 = vmul.f32 %v1013_v63, %v1011_v58  ;;  %v1025_v4 = vmul.f32 %v1024_v0, %v1011_v58 }
 0x660   : > { %v1026_v6 = vadd.f32 0.014752088, %v1025_v4  ;;  %v1015_v7 = vadd.f32 0.0036580483, %v1014_v2 }
 0x662   : > { %v1027_v9 = vmul.f32 %v1026_v6, %v1011_v58  ;;  %v1016_v13 = vmul.f32 %v1015_v7, %v1011_v58 }
 0x664   : > { %v1028_v12 = vadd.f32 0.112945676, %v1027_v9  ;;  %v1017_v16 = vadd.f32 0.05243302, %v1016_v13 }
 0x666   : > { %v1029_v14 = vmul.f32 %v1028_v12, %v1011_v58  ;;  %v1018_v20 = vmul.f32 %v1017_v16, %v1011_v58 }
 0x668   : > { %v1030_v15 = vadd.f32 0.4994258, %v1029_v14  ;;  %v1019_v21 = vadd.f32 0.18741608, %v1018_v20 }
 0x66a   : > { %v1031_v17 = vmul.f32 %v1030_v15, %v1011_v58  ;;  %v1020_v23 = vmul.f32 %v1019_v21, %v1011_v58 }
 0x66c   : > { %v1032_v18 = vadd.f32 1.0, %v1031_v17  ;;  %v1021_v27 = vadd.f32 1.1283791, %v1020_v23 }
 0x66e   : > { %1386 = vrcp.f32 %v1032_v18  ;;  %v1044_v26 = vand.u32 2147483648, %v1032_v18  ;;  %v1042_v3 = vand.u32 2147483647, %v1032_v18  ;;  %vm1038_vm13 = vweird.f32 %v1032_v18 }
 0x66f   : > { %v1022_v31 = vmul.f32 %v1021_v27, %v1009_v54 }
 0x670   : > { %v1045_v30 = vor.u32 1.1754944e-38, %v1044_v26  ;;  %vm1043_vm15 = vcmp.eq.f32.partialorder %v1042_v3, 8.507059e+37 }
 0x674   : > { %v1387_v22 = vpop.eup %1386 }
 0x675   : > { %v1034_v24 = vmul.f32 %v1387_v22, %v1032_v18  ;;  %vm1039_vm12 = vweird.f32 %v1387_v22 }
 0x676   : > { %vm1040_vm14 = vmor %vm1038_vm13, %vm1039_vm12 }
 0x677   : > { %v1035_v25 = vsub.f32 1.0, %v1034_v24 }
 0x679   : > { %v1036_v28 = vmul.f32 %v1387_v22, %v1035_v25 }
 0x67b   : > { %v1037_v29 = vadd.f32 %v1387_v22, %v1036_v28 }
 0x67d   : > { %v1041_v32 = vsel %vm1040_vm14, %v1387_v22, %v1037_v29 }
 0x67e   : > { %v1046_v33 = vsel %vm1043_vm15, %v1045_v30, %v1041_v32 }
 0x67f   : > { %v1047_v34 = vmul.f32 %v1046_v33, %v1022_v31 }
 0x681   : > { %v1310_v35 = vclamps-f32 %v1047_v34, 1.0 }
 0x683   : > { %v1050_v37 = vadd.f32 1.0, %v1310_v35 }
 0x685   : > { %v1051_v11 = vmul.f32 %v1050_v37, %v1008_v36 }
 0x687   : > { %1084 = vmatmul.f32.vlgmr.msra.gmra.mxu2 %v1051_v11 }
 0x70a   : > { %v1085_v39 = vpop.f32.mrf.mxu2 }
 0x70b   : > { %v1088_v40 = vadd.f32 %v1085_v39, %v1663_v19  ;;  %1098 = sbr.rel (%p1311_p8) target bundleno = 1809 (0x711), region = 84 }
 0x70d   : > { %v1093_v41 = vadd.f32 %v1371_v38, %v1088_v40 }
 0x70f   : > { %1094 = vst.msk [vmem:[#allocation2] sm:$0xff] %vm679_vm1, %v1093_v41 }
 0x710   : > { %1099 = vst.msk [vmem:[%s1605_s3] sm:$0xff] %vm679_vm1, %v1093_v41 }
 0x711 PF: > { %s1778_s17 = sld [smem:[#allocation6_spill]] }
 0x712   : > { %s1779_s29 = sld [smem:[#allocation4_spill]] }
 0x713   : > { %s1780_s30 = sld [smem:[#allocation5_spill]] }
 0x714   : > { %s1781_s15 = sld [smem:[#allocation7_spill]] }
 0x715   : > { %s1782_s16 = sld [smem:[#allocation8_spill]] }
 0x717   : > { %s24_s17 = sadd.s32 1, %s1778_s17  }
 0x718   : > { %p21_p9 = scmp.ge.s32.totalorder %s24_s17, 6  }
 0x71a   :  { %23 = sbr.rel (!%p21_p9) target bundleno = 7 (0x7), region = 150 }

</bundles_post_ra>
